<compile_context>
chip_gen: v7x
topology: tpu7x:2x2x1
jax: 0.10.0
libtpu: 0.0.40
codegen_flags: <defaults>
</compile_context>

<pallas_src>
import numpy as np
import jax
import jax.numpy as jnp
from jax import lax
from jax.experimental import pallas as pl
from jax.experimental.pallas import tpu as pltpu


def _relu(x):
    return jnp.maximum(x, 0.0)


def top_down_kernel(
    x_ref, qcat_ref, oh_ref,
    wc_ref, bc_ref,
    wqc_ref, bqc_ref,
    wvp_ref, bvp_ref,
    wqpn_ref, bqp_ref, bqn_ref,
    watt_ref, batt_ref,
    wvn_ref, bvn_ref,
    wc1_ref, bc1_ref,
    wc2_ref, bc2_ref,
    out_ref,
):
    f32 = jnp.float32
    bf16 = jnp.bfloat16
    Bt, Rp, _ = oh_ref.shape
    P = x_ref.shape[0] // Bt
    Ha = bqp_ref.shape[-1]

    # ---- convnet: 1x1 conv (pointwise) + ReLU  ->  v : (Bt*P, Cv) ----
    # TODO(synk): real model uses a VGG backbone; replaced by a 1x1 conv projection.
    v = _relu(jnp.dot(x_ref[...], wc_ref[...], preferred_element_type=f32) + bc_ref[...])
    v_b = v.astype(bf16)

    # ---- query_composer: ReLU([verb_embd ; role_embd] @ Wqc + b) : (Bt*Rp, Hq) ----
    q_emb = _relu(jnp.dot(qcat_ref[...], wqc_ref[...], preferred_element_type=f32)
                  + bqc_ref[...])
    q_emb_b = q_emb.astype(bf16)

    # ---- attention projections; Wqp and Wqnet fused into one 128-lane matmul ----
    v_proj = _relu(jnp.dot(v_b, wvp_ref[...], preferred_element_type=f32) + bvp_ref[...])
    q_pn = jnp.dot(q_emb_b, wqpn_ref[...], preferred_element_type=f32)   # (Bt*Rp, Ha+M)
    q_proj = _relu(q_pn[:, :Ha] + bqp_ref[...])                          # (Bt*Rp, Ha)
    q_repr = _relu(q_pn[:, Ha:] + bqn_ref[...])                          # q_net output

    # ---- top-down attention logits over positions (batched over Bt) ----
    qw = (q_proj * watt_ref[...]).reshape(Bt, Rp, Ha).astype(bf16)
    vp3 = v_proj.reshape(Bt, P, Ha).astype(bf16)
    logits = jnp.einsum('brh,bph->brp', qw, vp3,
                        preferred_element_type=f32) + batt_ref[0]        # (Bt, Rp, P)
    m = jnp.max(logits, axis=-1, keepdims=True)
    e = jnp.exp(logits - m)                          # unnormalized softmax
    denom = jnp.sum(e, axis=-1, keepdims=True)       # (Bt, Rp, 1)

    # ---- v_emb = (softmax * role_mask) @ v; normalization + mask folded into a
    # per-row rescale of the small attended result (identical math).
    # TODO(synk): exact "updated att" role-encoding semantics unavailable; the
    # verb->role one-hot acts as a post-softmax mask on padded roles.
    v3 = v_b.reshape(Bt, P, -1)
    ve = jnp.einsum('brp,bpc->brc', e.astype(bf16), v3, preferred_element_type=f32)
    scale = oh_ref[...] * pl.reciprocal(denom, approx=True)              # (Bt, Rp, 1)
    v_emb = (ve * scale).reshape(Bt * Rp, -1)                            # (Bt*Rp, Cv)

    # ---- v_net (Linear + ReLU) ----
    v_repr = _relu(jnp.dot(v_emb.astype(bf16), wvn_ref[...], preferred_element_type=f32)
                   + bvn_ref[...])

    # ---- MFB: eltwise product, (Dropout_C = identity), sum-pool over trailing dim
    # of size 1 (no-op), signed sqrt, L2 normalize ----
    mfb = q_repr * v_repr
    sq = jnp.sqrt(jnp.abs(mfb))
    signed = jnp.where(mfb >= 0.0, sq, -sq)
    sumsq = jnp.sum(signed * signed, axis=-1, keepdims=True)
    out = signed * lax.rsqrt(jnp.maximum(sumsq, 1e-24))   # == F.normalize semantics

    # ---- classifier: Linear + ReLU + (Dropout = identity) + Linear ----
    h = _relu(jnp.dot(out.astype(bf16), wc1_ref[...], preferred_element_type=f32)
              + bc1_ref[...])
    cls = jnp.dot(h.astype(bf16), wc2_ref[...], preferred_element_type=f32) + bc2_ref[...]

    out_ref[...] = cls.reshape(Bt, Rp, -1).astype(out_ref.dtype)


def top_down_forward(v_org, gt_verb, params, *, bt=4):
    """v_org: (B, C_in, H, W) NCHW;  gt_verb: (B,) int32.  Returns (B, R, num_labels)."""
    B, Cin, H, W = v_org.shape
    P = H * W
    R = params['verb2role_idx'].shape[1]
    Rp = -(-R // 8) * 8          # pad role count to a sublane multiple
    B_pad = -(-B // bt) * bt     # pad batch to a multiple of the per-step block
    L = params['w_c2'].shape[1]

    # NCHW -> (B, P, Cin) positions-major.
    # TODO(synk): at real Cin (VGG features) produce NHWC upstream to avoid this
    # extra HBM transpose pass.
    x = jnp.transpose(v_org, (0, 2, 3, 1)).reshape(B, P, Cin)

    # "encoder" glue (embedding lookups / role-id + mask tables) stays in JAX.
    verb_e = params['verb_table'][gt_verb]                               # (B, E)
    role_idx = params['verb2role_idx'][gt_verb]                          # (B, R)
    role_e = params['role_table'][role_idx]                              # (B, R, E)
    mask = params['verb2role_mask'][gt_verb].astype(jnp.float32)         # (B, R)
    qcat = jnp.concatenate(
        [jnp.broadcast_to(verb_e[:, None, :], role_e.shape), role_e], axis=-1)  # (B, R, 2E)

    # pad roles -> Rp and batch -> B_pad; padded rows are sliced off at the end.
    x = jnp.pad(x, ((0, B_pad - B), (0, 0), (0, 0)))
    qcat = jnp.pad(qcat, ((0, B_pad - B), (0, Rp - R), (0, 0)))
    mask = jnp.pad(mask, ((0, B_pad - B), (0, Rp - R)))

    bf16 = jnp.bfloat16
    x_flat = x.reshape(B_pad * P, Cin).astype(bf16)            # (B_pad*P, Cin)
    qcat_flat = qcat.reshape(B_pad * Rp, -1).astype(bf16)      # (B_pad*Rp, 2E)
    oh = mask[..., None]                                       # (B_pad, Rp, 1) f32

    # weight prep: fuse q_proj / q_net weights into one 128-lane matmul; cast MXU
    # operands to bf16 (f32 accumulation in-kernel); keep biases / softmax in f32.
    w_qpn = jnp.concatenate([params['w_qp'], params['w_qnet']], axis=1).astype(bf16)
    wb = lambda k: params[k].astype(bf16)
    # (array, lives_in_smem) pairs, in kernel-argument order.
    wlist = [
        (wb('w_conv'), False), (params['b_conv'], False),
        (wb('w_qc'), False), (params['b_qc'], False),
        (wb('w_vp'), False), (params['b_vp'], False),
        (w_qpn, False), (params['b_qp'], False), (params['b_qnet'], False),
        (params['w_att'], False), (params['b_att'].reshape(1), True),
        (wb('w_vnet'), False), (params['b_vnet'], False),
        (wb('w_c1'), False), (params['b_c1'], False),
        (wb('w_c2'), False), (params['b_c2'], False),
    ]
    weight_arrays = [a for a, _ in wlist]
    # TODO(synk): at real model sizes, mark these grid-invariant weight specs with
    # pipeline_mode=pl.Buffered(1) and set vmem_limit_bytes (v7x has only 64 MiB VMEM).
    weight_specs = [
        pl.BlockSpec(memory_space=pltpu.MemorySpace.SMEM) if smem
        else pl.BlockSpec(a.shape, lambda b: (0, 0))
        for a, smem in wlist
    ]

    in_specs = [
        pl.BlockSpec((bt * P, Cin), lambda b: (b, 0)),
        pl.BlockSpec((bt * Rp, qcat_flat.shape[1]), lambda b: (b, 0)),
        pl.BlockSpec((bt, Rp, 1), lambda b: (b, 0, 0)),
    ] + weight_specs

    out = pl.pallas_call(
        top_down_kernel,
        out_shape=jax.ShapeDtypeStruct((B_pad, Rp, L), jnp.float32),
        grid=(B_pad // bt,),
        in_specs=in_specs,
        out_specs=pl.BlockSpec((bt, Rp, L), lambda b: (b, 0, 0)),
        compiler_params=pltpu.CompilerParams(dimension_semantics=("parallel",)),
    )(x_flat, qcat_flat, oh, *weight_arrays)
    return out[:B, :R, :]


def reference_forward(v_org, gt_verb, p):
    """Pure-JAX f32 reference mirroring the PyTorch forward (eval mode)."""
    B, Cin, H, W = v_org.shape
    x = jnp.transpose(v_org, (0, 2, 3, 1)).reshape(B, H * W, Cin)
    v = jax.nn.relu(x @ p['w_conv'] + p['b_conv'])                   # (B, P, Cv)
    verb_e = p['verb_table'][gt_verb]
    role_idx = p['verb2role_idx'][gt_verb]
    role_e = p['role_table'][role_idx]
    mask = p['verb2role_mask'][gt_verb].astype(jnp.float32)
    concat = jnp.concatenate(
        [jnp.broadcast_to(verb_e[:, None, :], role_e.shape), role_e], axis=-1)
    q_emb = jax.nn.relu(concat @ p['w_qc'] + p['b_qc'])
    v_proj = jax.nn.relu(v @ p['w_vp'] + p['b_vp'])
    q_proj = jax.nn.relu(q_emb @ p['w_qp'] + p['b_qp'])
    logits = jnp.einsum('brh,bph->brp', q_proj * p['w_att'][None], v_proj) + p['b_att'][0, 0]
    att = jax.nn.softmax(logits, axis=-1) * mask[:, :, None]
    v_emb = jnp.einsum('brp,bpc->brc', att, v)
    v_repr = jax.nn.relu(v_emb @ p['w_vnet'] + p['b_vnet'])
    q_repr = jax.nn.relu(q_emb @ p['w_qnet'] + p['b_qnet'])
    mfb = q_repr * v_repr
    signed = jnp.sqrt(jax.nn.relu(mfb)) - jnp.sqrt(jax.nn.relu(-mfb))
    nrm = jnp.sqrt(jnp.sum(signed * signed, axis=-1, keepdims=True))
    out = signed / jnp.maximum(nrm, 1e-12)
    h = jax.nn.relu(out @ p['w_c1'] + p['b_c1'])
    return h @ p['w_c2'] + p['b_c2']


if __name__ == "__main__":
    # Small synthetic shapes consistent with the module's forward.
    B, Cin, H, W = 8, 4, 8, 8          # image batch, channels, spatial (P = 64)
    Cv = 32                             # convnet output channels (v_dim)
    E = 32                              # verb/role embedding size (concat -> 2E = 64)
    Hq = 64                             # query_composer hidden
    Ha = 64                             # attention hidden
    M = 64                              # q_net / v_net (mfb) dim  (Ha + M = 128 fused)
    Hc = 128                            # classifier hidden
    L = 32                              # num labels
    R = 6                               # encoder.max_role_count
    n_verbs, n_roles = 10, 12

    key = jax.random.PRNGKey(0)
    ks = jax.random.split(key, 24)

    def init(k, shape, scale=0.05):
        return (scale * jax.random.normal(k, shape)).astype(jnp.float32)

    params = {
        'w_conv': init(ks[0], (Cin, Cv)), 'b_conv': init(ks[1], (1, Cv)),
        'w_qc': init(ks[2], (2 * E, Hq)), 'b_qc': init(ks[3], (1, Hq)),
        'w_vp': init(ks[4], (Cv, Ha)), 'b_vp': init(ks[5], (1, Ha)),
        'w_qp': init(ks[6], (Hq, Ha)), 'b_qp': init(ks[7], (1, Ha)),
        'w_att': init(ks[8], (1, Ha)), 'b_att': init(ks[9], (1, 1)),
        'w_vnet': init(ks[10], (Cv, M)), 'b_vnet': init(ks[11], (1, M)),
        'w_qnet': init(ks[12], (Hq, M)), 'b_qnet': init(ks[13], (1, M)),
        'w_c1': init(ks[14], (M, Hc)), 'b_c1': init(ks[15], (1, Hc)),
        'w_c2': init(ks[16], (Hc, L)), 'b_c2': init(ks[17], (1, L)),
        'verb_table': init(ks[18], (n_verbs, E), 1.0),
        # role embedding with padding_idx = n_roles initialized to zeros
        'role_table': init(ks[19], (n_roles + 1, E), 1.0).at[n_roles].set(0.0),
    }

    # Deterministic synthetic encoder tables: verb -> role ids (padded) + presence mask.
    idx_rows, mask_rows = [], []
    for vrb in range(n_verbs):
        cnt = 2 + (vrb % (R - 1))
        roles = [(vrb + j) % n_roles for j in range(cnt)] + [n_roles] * (R - cnt)
        idx_rows.append(roles)
        mask_rows.append([1] * cnt + [0] * (R - cnt))
    params['verb2role_idx'] = jnp.array(idx_rows, dtype=jnp.int32)
    params['verb2role_mask'] = jnp.array(mask_rows, dtype=jnp.int32)

    kx, kv = jax.random.split(ks[20])
    v_org = jax.random.normal(kx, (B, Cin, H, W), dtype=jnp.float32)
    gt_verb = jax.random.randint(kv, (B,), 0, n_verbs)

    out = top_down_forward(v_org, gt_verb, params, bt=4)
    out = jax.block_until_ready(out)
    assert out.shape == (B, R, L)

    ref = reference_forward(v_org, gt_verb, params)
    # bf16 MXU operands + approximate reciprocal in-kernel -> looser tolerance than f32.
    np.testing.assert_allclose(np.asarray(out), np.asarray(ref), rtol=2e-2, atol=2e-2)

    print("KERNEL_OK")
</pallas_src>

<mosaic_0001>
module attributes {stable_mosaic.version = 11 : i64} {
  func.func @top_down_kernel(%arg0: i32, %arg1: memref<256x4xbf16, #tpu.memory_space<vmem>>, %arg2: memref<32x64xbf16, #tpu.memory_space<vmem>>, %arg3: memref<4x8x1xf32, #tpu.memory_space<vmem>>, %arg4: memref<4x32xbf16, #tpu.memory_space<vmem>>, %arg5: memref<1x32xf32, #tpu.memory_space<vmem>>, %arg6: memref<64x64xbf16, #tpu.memory_space<vmem>>, %arg7: memref<1x64xf32, #tpu.memory_space<vmem>>, %arg8: memref<32x64xbf16, #tpu.memory_space<vmem>>, %arg9: memref<1x64xf32, #tpu.memory_space<vmem>>, %arg10: memref<64x128xbf16, #tpu.memory_space<vmem>>, %arg11: memref<1x64xf32, #tpu.memory_space<vmem>>, %arg12: memref<1x64xf32, #tpu.memory_space<vmem>>, %arg13: memref<1x64xf32, #tpu.memory_space<vmem>>, %arg14: memref<1xf32, #tpu.memory_space<smem>>, %arg15: memref<32x64xbf16, #tpu.memory_space<vmem>>, %arg16: memref<1x64xf32, #tpu.memory_space<vmem>>, %arg17: memref<64x128xbf16, #tpu.memory_space<vmem>>, %arg18: memref<1x128xf32, #tpu.memory_space<vmem>>, %arg19: memref<128x32xbf16, #tpu.memory_space<vmem>>, %arg20: memref<1x32xf32, #tpu.memory_space<vmem>>, %arg21: memref<4x8x32xf32, #tpu.memory_space<vmem>>) attributes {dimension_semantics = [#tpu.dimension_semantics<parallel>], iteration_bounds = array<i64: 2>, scalar_prefetch = 0 : i64, scratch_operands = 0 : i64, tpu.core_type = #tpu.core_type<tc>, window_params = [{transform_indices = @transform_0, window_bounds = array<i64: 256, 4>}, {transform_indices = @transform_1, window_bounds = array<i64: 32, 64>}, {transform_indices = @transform_2, window_bounds = array<i64: 4, 8, 1>}, {pipeline_mode = #tpu.pipeline_mode<synchronous>, transform_indices = @transform_3, window_bounds = array<i64: 4, 32>}, {pipeline_mode = #tpu.pipeline_mode<synchronous>, transform_indices = @transform_4, window_bounds = array<i64: 1, 32>}, {pipeline_mode = #tpu.pipeline_mode<synchronous>, transform_indices = @transform_5, window_bounds = array<i64: 64, 64>}, {pipeline_mode = #tpu.pipeline_mode<synchronous>, transform_indices = @transform_6, window_bounds = array<i64: 1, 64>}, {pipeline_mode = #tpu.pipeline_mode<synchronous>, transform_indices = @transform_7, window_bounds = array<i64: 32, 64>}, {pipeline_mode = #tpu.pipeline_mode<synchronous>, transform_indices = @transform_8, window_bounds = array<i64: 1, 64>}, {pipeline_mode = #tpu.pipeline_mode<synchronous>, transform_indices = @transform_9, window_bounds = array<i64: 64, 128>}, {pipeline_mode = #tpu.pipeline_mode<synchronous>, transform_indices = @transform_10, window_bounds = array<i64: 1, 64>}, {pipeline_mode = #tpu.pipeline_mode<synchronous>, transform_indices = @transform_11, window_bounds = array<i64: 1, 64>}, {pipeline_mode = #tpu.pipeline_mode<synchronous>, transform_indices = @transform_12, window_bounds = array<i64: 1, 64>}, {transform_indices = @transform_13, window_bounds = array<i64: 1>}, {pipeline_mode = #tpu.pipeline_mode<synchronous>, transform_indices = @transform_14, window_bounds = array<i64: 32, 64>}, {pipeline_mode = #tpu.pipeline_mode<synchronous>, transform_indices = @transform_15, window_bounds = array<i64: 1, 64>}, {pipeline_mode = #tpu.pipeline_mode<synchronous>, transform_indices = @transform_16, window_bounds = array<i64: 64, 128>}, {pipeline_mode = #tpu.pipeline_mode<synchronous>, transform_indices = @transform_17, window_bounds = array<i64: 1, 128>}, {pipeline_mode = #tpu.pipeline_mode<synchronous>, transform_indices = @transform_18, window_bounds = array<i64: 128, 32>}, {pipeline_mode = #tpu.pipeline_mode<synchronous>, transform_indices = @transform_19, window_bounds = array<i64: 1, 32>}, {transform_indices = @transform_20, window_bounds = array<i64: 4, 8, 32>}]} {
    %c0 = arith.constant 0 : index
    %c0_0 = arith.constant 0 : index
    %0 = vector.load %arg1[%c0, %c0_0] : memref<256x4xbf16, #tpu.memory_space<vmem>>, vector<256x4xbf16>
    %c0_1 = arith.constant 0 : index
    %c0_2 = arith.constant 0 : index
    %1 = vector.load %arg4[%c0_1, %c0_2] : memref<4x32xbf16, #tpu.memory_space<vmem>>, vector<4x32xbf16>
    %cst = arith.constant dense<0.000000e+00> : vector<256x32xf32>
    %2 = tpu.matmul %0, %1, %cst {dimension_numbers = #tpu.dot_dimension_numbers<[1], [0], [0], [1], [0, 0, 1, 1], [], []>} : vector<256x4xbf16>, vector<4x32xbf16>, vector<256x32xf32> -> vector<256x32xf32>
    %c0_3 = arith.constant 0 : index
    %c0_4 = arith.constant 0 : index
    %3 = vector.load %arg5[%c0_3, %c0_4] : memref<1x32xf32, #tpu.memory_space<vmem>>, vector<1x32xf32>
    %4 = vector.broadcast %3 : vector<1x32xf32> to vector<256x32xf32>
    %5 = arith.addf %2, %4 : vector<256x32xf32>
    %cst_5 = arith.constant 0.000000e+00 : f32
    %6 = vector.broadcast %cst_5 : f32 to vector<256x32xf32>
    %7 = arith.maximumf %5, %6 : vector<256x32xf32>
    %8 = arith.truncf %7 : vector<256x32xf32> to vector<256x32xbf16>
    %c0_6 = arith.constant 0 : index
    %c0_7 = arith.constant 0 : index
    %9 = vector.load %arg2[%c0_6, %c0_7] : memref<32x64xbf16, #tpu.memory_space<vmem>>, vector<32x64xbf16>
    %c0_8 = arith.constant 0 : index
    %c0_9 = arith.constant 0 : index
    %10 = vector.load %arg6[%c0_8, %c0_9] : memref<64x64xbf16, #tpu.memory_space<vmem>>, vector<64x64xbf16>
    %cst_10 = arith.constant dense<0.000000e+00> : vector<32x64xf32>
    %11 = tpu.matmul %9, %10, %cst_10 {dimension_numbers = #tpu.dot_dimension_numbers<[1], [0], [0], [1], [0, 0, 1, 1], [], []>} : vector<32x64xbf16>, vector<64x64xbf16>, vector<32x64xf32> -> vector<32x64xf32>
    %c0_11 = arith.constant 0 : index
    %c0_12 = arith.constant 0 : index
    %12 = vector.load %arg7[%c0_11, %c0_12] : memref<1x64xf32, #tpu.memory_space<vmem>>, vector<1x64xf32>
    %13 = vector.broadcast %12 : vector<1x64xf32> to vector<32x64xf32>
    %14 = arith.addf %11, %13 : vector<32x64xf32>
    %cst_13 = arith.constant 0.000000e+00 : f32
    %15 = vector.broadcast %cst_13 : f32 to vector<32x64xf32>
    %16 = arith.maximumf %14, %15 : vector<32x64xf32>
    %17 = arith.truncf %16 : vector<32x64xf32> to vector<32x64xbf16>
    %c0_14 = arith.constant 0 : index
    %c0_15 = arith.constant 0 : index
    %18 = vector.load %arg8[%c0_14, %c0_15] : memref<32x64xbf16, #tpu.memory_space<vmem>>, vector<32x64xbf16>
    %cst_16 = arith.constant dense<0.000000e+00> : vector<256x64xf32>
    %19 = tpu.matmul %8, %18, %cst_16 {dimension_numbers = #tpu.dot_dimension_numbers<[1], [0], [0], [1], [0, 0, 1, 1], [], []>} : vector<256x32xbf16>, vector<32x64xbf16>, vector<256x64xf32> -> vector<256x64xf32>
    %c0_17 = arith.constant 0 : index
    %c0_18 = arith.constant 0 : index
    %20 = vector.load %arg9[%c0_17, %c0_18] : memref<1x64xf32, #tpu.memory_space<vmem>>, vector<1x64xf32>
    %21 = vector.broadcast %20 : vector<1x64xf32> to vector<256x64xf32>
    %22 = arith.addf %19, %21 : vector<256x64xf32>
    %cst_19 = arith.constant 0.000000e+00 : f32
    %23 = vector.broadcast %cst_19 : f32 to vector<256x64xf32>
    %24 = arith.maximumf %22, %23 : vector<256x64xf32>
    %c0_20 = arith.constant 0 : index
    %c0_21 = arith.constant 0 : index
    %25 = vector.load %arg10[%c0_20, %c0_21] : memref<64x128xbf16, #tpu.memory_space<vmem>>, vector<64x128xbf16>
    %cst_22 = arith.constant dense<0.000000e+00> : vector<32x128xf32>
    %26 = tpu.matmul %17, %25, %cst_22 {dimension_numbers = #tpu.dot_dimension_numbers<[1], [0], [0], [1], [0, 0, 1, 1], [], []>} : vector<32x64xbf16>, vector<64x128xbf16>, vector<32x128xf32> -> vector<32x128xf32>
    %27 = vector.extract_strided_slice %26 {offsets = [0, 0], sizes = [32, 64], strides = [1, 1]} : vector<32x128xf32> to vector<32x64xf32>
    %c0_23 = arith.constant 0 : index
    %c0_24 = arith.constant 0 : index
    %28 = vector.load %arg11[%c0_23, %c0_24] : memref<1x64xf32, #tpu.memory_space<vmem>>, vector<1x64xf32>
    %29 = vector.broadcast %28 : vector<1x64xf32> to vector<32x64xf32>
    %30 = arith.addf %27, %29 : vector<32x64xf32>
    %cst_25 = arith.constant 0.000000e+00 : f32
    %31 = vector.broadcast %cst_25 : f32 to vector<32x64xf32>
    %32 = arith.maximumf %30, %31 : vector<32x64xf32>
    %33 = vector.extract_strided_slice %26 {offsets = [0, 64], sizes = [32, 64], strides = [1, 1]} : vector<32x128xf32> to vector<32x64xf32>
    %c0_26 = arith.constant 0 : index
    %c0_27 = arith.constant 0 : index
    %34 = vector.load %arg12[%c0_26, %c0_27] : memref<1x64xf32, #tpu.memory_space<vmem>>, vector<1x64xf32>
    %35 = vector.broadcast %34 : vector<1x64xf32> to vector<32x64xf32>
    %36 = arith.addf %33, %35 : vector<32x64xf32>
    %cst_28 = arith.constant 0.000000e+00 : f32
    %37 = vector.broadcast %cst_28 : f32 to vector<32x64xf32>
    %38 = arith.maximumf %36, %37 : vector<32x64xf32>
    %c0_29 = arith.constant 0 : index
    %c0_30 = arith.constant 0 : index
    %39 = vector.load %arg13[%c0_29, %c0_30] : memref<1x64xf32, #tpu.memory_space<vmem>>, vector<1x64xf32>
    %40 = vector.broadcast %39 : vector<1x64xf32> to vector<32x64xf32>
    %41 = arith.mulf %32, %40 : vector<32x64xf32>
    %42 = vector.shape_cast %41 : vector<32x64xf32> to vector<4x8x64xf32>
    %43 = arith.truncf %42 : vector<4x8x64xf32> to vector<4x8x64xbf16>
    %44 = vector.shape_cast %24 : vector<256x64xf32> to vector<4x64x64xf32>
    %45 = arith.truncf %44 : vector<4x64x64xf32> to vector<4x64x64xbf16>
    "tpu.trace_start"() <{level = 10 : i32, message = "brh,bph->brp"}> : () -> ()
    %cst_31 = arith.constant dense<0.000000e+00> : vector<4x8x64xf32>
    %46 = tpu.matmul %43, %45, %cst_31 {dimension_numbers = #tpu.dot_dimension_numbers<[2], [2], [1], [1], [0, 0, 0, 1, 1, 1], [0], [0]>} : vector<4x8x64xbf16>, vector<4x64x64xbf16>, vector<4x8x64xf32> -> vector<4x8x64xf32>
    "tpu.trace_stop"() : () -> ()
    %c0_32 = arith.constant 0 : index
    %47 = memref.load %arg14[%c0_32] : memref<1xf32, #tpu.memory_space<smem>>
    %48 = vector.broadcast %47 : f32 to vector<4x8x64xf32>
    %49 = arith.addf %46, %48 : vector<4x8x64xf32>
    %cst_33 = arith.constant dense<0xFF800000> : vector<4x8xf32>
    %50 = vector.multi_reduction <maximumf>, %49, %cst_33 [2] : vector<4x8x64xf32> to vector<4x8xf32>
    %51 = vector.shape_cast %50 : vector<4x8xf32> to vector<4x8x1xf32>
    %52 = vector.broadcast %51 : vector<4x8x1xf32> to vector<4x8x64xf32>
    %53 = arith.subf %49, %52 : vector<4x8x64xf32>
    %54 = math.exp %53 : vector<4x8x64xf32>
    %cst_34 = arith.constant dense<0.000000e+00> : vector<4x8xf32>
    %55 = vector.multi_reduction <add>, %54, %cst_34 [2] : vector<4x8x64xf32> to vector<4x8xf32>
    %56 = vector.shape_cast %55 : vector<4x8xf32> to vector<4x8x1xf32>
    %57 = vector.shape_cast %8 : vector<256x32xbf16> to vector<4x64x32xbf16>
    %58 = arith.truncf %54 : vector<4x8x64xf32> to vector<4x8x64xbf16>
    "tpu.trace_start"() <{level = 10 : i32, message = "brp,bpc->brc"}> : () -> ()
    %cst_35 = arith.constant dense<0.000000e+00> : vector<4x8x32xf32>
    %59 = tpu.matmul %58, %57, %cst_35 {dimension_numbers = #tpu.dot_dimension_numbers<[2], [1], [1], [2], [0, 0, 0, 1, 1, 2], [0], [0]>} : vector<4x8x64xbf16>, vector<4x64x32xbf16>, vector<4x8x32xf32> -> vector<4x8x32xf32>
    "tpu.trace_stop"() : () -> ()
    %c0_36 = arith.constant 0 : index
    %c0_37 = arith.constant 0 : index
    %c0_38 = arith.constant 0 : index
    %60 = vector.load %arg3[%c0_36, %c0_37, %c0_38] : memref<4x8x1xf32, #tpu.memory_space<vmem>>, vector<4x8x1xf32>
    %61 = tpu.reciprocal %56 {approx = true} : vector<4x8x1xf32> -> vector<4x8x1xf32>
    %62 = arith.mulf %60, %61 : vector<4x8x1xf32>
    %63 = vector.broadcast %62 : vector<4x8x1xf32> to vector<4x8x32xf32>
    %64 = arith.mulf %59, %63 : vector<4x8x32xf32>
    %65 = vector.shape_cast %64 : vector<4x8x32xf32> to vector<32x32xf32>
    %66 = arith.truncf %65 : vector<32x32xf32> to vector<32x32xbf16>
    %c0_39 = arith.constant 0 : index
    %c0_40 = arith.constant 0 : index
    %67 = vector.load %arg15[%c0_39, %c0_40] : memref<32x64xbf16, #tpu.memory_space<vmem>>, vector<32x64xbf16>
    %cst_41 = arith.constant dense<0.000000e+00> : vector<32x64xf32>
    %68 = tpu.matmul %66, %67, %cst_41 {dimension_numbers = #tpu.dot_dimension_numbers<[1], [0], [0], [1], [0, 0, 1, 1], [], []>} : vector<32x32xbf16>, vector<32x64xbf16>, vector<32x64xf32> -> vector<32x64xf32>
    %c0_42 = arith.constant 0 : index
    %c0_43 = arith.constant 0 : index
    %69 = vector.load %arg16[%c0_42, %c0_43] : memref<1x64xf32, #tpu.memory_space<vmem>>, vector<1x64xf32>
    %70 = vector.broadcast %69 : vector<1x64xf32> to vector<32x64xf32>
    %71 = arith.addf %68, %70 : vector<32x64xf32>
    %cst_44 = arith.constant 0.000000e+00 : f32
    %72 = vector.broadcast %cst_44 : f32 to vector<32x64xf32>
    %73 = arith.maximumf %71, %72 : vector<32x64xf32>
    %74 = arith.mulf %38, %73 : vector<32x64xf32>
    %75 = math.absf %74 : vector<32x64xf32>
    %76 = math.sqrt %75 : vector<32x64xf32>
    %cst_45 = arith.constant 0.000000e+00 : f32
    %77 = vector.broadcast %cst_45 : f32 to vector<32x64xf32>
    %78 = arith.cmpf oge, %74, %77 : vector<32x64xf32>
    %cst_46 = arith.constant 0.000000e+00 : f32
    %79 = vector.broadcast %cst_46 : f32 to vector<32x64xf32>
    %80 = arith.subf %79, %76 : vector<32x64xf32>
    %81 = arith.select %78, %76, %80 : vector<32x64xi1>, vector<32x64xf32>
    %82 = arith.mulf %81, %81 : vector<32x64xf32>
    %cst_47 = arith.constant dense<0.000000e+00> : vector<32xf32>
    %83 = vector.multi_reduction <add>, %82, %cst_47 [1] : vector<32x64xf32> to vector<32xf32>
    %84 = vector.shape_cast %83 : vector<32xf32> to vector<32x1xf32>
    %cst_48 = arith.constant 1.000000e-24 : f32
    %85 = vector.broadcast %cst_48 : f32 to vector<32x1xf32>
    %86 = arith.maximumf %84, %85 : vector<32x1xf32>
    %87 = math.rsqrt %86 : vector<32x1xf32>
    %88 = vector.broadcast %87 : vector<32x1xf32> to vector<32x64xf32>
    %89 = arith.mulf %81, %88 : vector<32x64xf32>
    %90 = arith.truncf %89 : vector<32x64xf32> to vector<32x64xbf16>
    %c0_49 = arith.constant 0 : index
    %c0_50 = arith.constant 0 : index
    %91 = vector.load %arg17[%c0_49, %c0_50] : memref<64x128xbf16, #tpu.memory_space<vmem>>, vector<64x128xbf16>
    %cst_51 = arith.constant dense<0.000000e+00> : vector<32x128xf32>
    %92 = tpu.matmul %90, %91, %cst_51 {dimension_numbers = #tpu.dot_dimension_numbers<[1], [0], [0], [1], [0, 0, 1, 1], [], []>} : vector<32x64xbf16>, vector<64x128xbf16>, vector<32x128xf32> -> vector<32x128xf32>
    %c0_52 = arith.constant 0 : index
    %c0_53 = arith.constant 0 : index
    %93 = vector.load %arg18[%c0_52, %c0_53] : memref<1x128xf32, #tpu.memory_space<vmem>>, vector<1x128xf32>
    %94 = vector.broadcast %93 : vector<1x128xf32> to vector<32x128xf32>
    %95 = arith.addf %92, %94 : vector<32x128xf32>
    %cst_54 = arith.constant 0.000000e+00 : f32
    %96 = vector.broadcast %cst_54 : f32 to vector<32x128xf32>
    %97 = arith.maximumf %95, %96 : vector<32x128xf32>
    %98 = arith.truncf %97 : vector<32x128xf32> to vector<32x128xbf16>
    %c0_55 = arith.constant 0 : index
    %c0_56 = arith.constant 0 : index
    %99 = vector.load %arg19[%c0_55, %c0_56] : memref<128x32xbf16, #tpu.memory_space<vmem>>, vector<128x32xbf16>
    %cst_57 = arith.constant dense<0.000000e+00> : vector<32x32xf32>
    %100 = tpu.matmul %98, %99, %cst_57 {dimension_numbers = #tpu.dot_dimension_numbers<[1], [0], [0], [1], [0, 0, 1, 1], [], []>} : vector<32x128xbf16>, vector<128x32xbf16>, vector<32x32xf32> -> vector<32x32xf32>
    %c0_58 = arith.constant 0 : index
    %c0_59 = arith.constant 0 : index
    %101 = vector.load %arg20[%c0_58, %c0_59] : memref<1x32xf32, #tpu.memory_space<vmem>>, vector<1x32xf32>
    %102 = vector.broadcast %101 : vector<1x32xf32> to vector<32x32xf32>
    %103 = arith.addf %100, %102 : vector<32x32xf32>
    %104 = vector.shape_cast %103 : vector<32x32xf32> to vector<4x8x32xf32>
    %c0_60 = arith.constant 0 : index
    %c0_61 = arith.constant 0 : index
    %c0_62 = arith.constant 0 : index
    %105 = vector.load %arg21[%c0_60, %c0_61, %c0_62] : memref<4x8x32xf32, #tpu.memory_space<vmem>>, vector<4x8x32xf32>
    tpu.vector_store %arg21[%c0_60, %c0_61, %c0_62], %104 {strides = array<i32>} : memref<4x8x32xf32, #tpu.memory_space<vmem>>, vector<4x8x32xf32>,
    return
  }
  func.func @transform_0(%arg0: i32) -> (i32, i32) {
    %c0_i32 = arith.constant 0 : i32
    %c0_i32_0 = arith.constant 0 : i32
    return %arg0, %c0_i32 : i32, i32
  }
  func.func @transform_1(%arg0: i32) -> (i32, i32) {
    %c0_i32 = arith.constant 0 : i32
    %c0_i32_0 = arith.constant 0 : i32
    return %arg0, %c0_i32 : i32, i32
  }
  func.func @transform_2(%arg0: i32) -> (i32, i32, i32) {
    %c0_i32 = arith.constant 0 : i32
    %c0_i32_0 = arith.constant 0 : i32
    %c0_i32_1 = arith.constant 0 : i32
    return %arg0, %c0_i32, %c0_i32_0 : i32, i32, i32
  }
  func.func @transform_3(%arg0: i32) -> (i32, i32) {
    %c0_i32 = arith.constant 0 : i32
    %c0_i32_0 = arith.constant 0 : i32
    %c0_i32_1 = arith.constant 0 : i32
    return %c0_i32, %c0_i32_0 : i32, i32
  }
  func.func @transform_4(%arg0: i32) -> (i32, i32) {
    %c0_i32 = arith.constant 0 : i32
    %c0_i32_0 = arith.constant 0 : i32
    %c0_i32_1 = arith.constant 0 : i32
    return %c0_i32, %c0_i32_0 : i32, i32
  }
  func.func @transform_5(%arg0: i32) -> (i32, i32) {
    %c0_i32 = arith.constant 0 : i32
    %c0_i32_0 = arith.constant 0 : i32
    %c0_i32_1 = arith.constant 0 : i32
    return %c0_i32, %c0_i32_0 : i32, i32
  }
  func.func @transform_6(%arg0: i32) -> (i32, i32) {
    %c0_i32 = arith.constant 0 : i32
    %c0_i32_0 = arith.constant 0 : i32
    %c0_i32_1 = arith.constant 0 : i32
    return %c0_i32, %c0_i32_0 : i32, i32
  }
  func.func @transform_7(%arg0: i32) -> (i32, i32) {
    %c0_i32 = arith.constant 0 : i32
    %c0_i32_0 = arith.constant 0 : i32
    %c0_i32_1 = arith.constant 0 : i32
    return %c0_i32, %c0_i32_0 : i32, i32
  }
  func.func @transform_8(%arg0: i32) -> (i32, i32) {
    %c0_i32 = arith.constant 0 : i32
    %c0_i32_0 = arith.constant 0 : i32
    %c0_i32_1 = arith.constant 0 : i32
    return %c0_i32, %c0_i32_0 : i32, i32
  }
  func.func @transform_9(%arg0: i32) -> (i32, i32) {
    %c0_i32 = arith.constant 0 : i32
    %c0_i32_0 = arith.constant 0 : i32
    %c0_i32_1 = arith.constant 0 : i32
    return %c0_i32, %c0_i32_0 : i32, i32
  }
  func.func @transform_10(%arg0: i32) -> (i32, i32) {
    %c0_i32 = arith.constant 0 : i32
    %c0_i32_0 = arith.constant 0 : i32
    %c0_i32_1 = arith.constant 0 : i32
    return %c0_i32, %c0_i32_0 : i32, i32
  }
  func.func @transform_11(%arg0: i32) -> (i32, i32) {
    %c0_i32 = arith.constant 0 : i32
    %c0_i32_0 = arith.constant 0 : i32
    %c0_i32_1 = arith.constant 0 : i32
    return %c0_i32, %c0_i32_0 : i32, i32
  }
  func.func @transform_12(%arg0: i32) -> (i32, i32) {
    %c0_i32 = arith.constant 0 : i32
    %c0_i32_0 = arith.constant 0 : i32
    %c0_i32_1 = arith.constant 0 : i32
    return %c0_i32, %c0_i32_0 : i32, i32
  }
  func.func @transform_13(%arg0: i32) -> i32 {
    %c0_i32 = arith.constant 0 : i32
    %c0_i32_0 = arith.constant 0 : i32
    return %c0_i32 : i32
  }
  func.func @transform_14(%arg0: i32) -> (i32, i32) {
    %c0_i32 = arith.constant 0 : i32
    %c0_i32_0 = arith.constant 0 : i32
    %c0_i32_1 = arith.constant 0 : i32
    return %c0_i32, %c0_i32_0 : i32, i32
  }
  func.func @transform_15(%arg0: i32) -> (i32, i32) {
    %c0_i32 = arith.constant 0 : i32
    %c0_i32_0 = arith.constant 0 : i32
    %c0_i32_1 = arith.constant 0 : i32
    return %c0_i32, %c0_i32_0 : i32, i32
  }
  func.func @transform_16(%arg0: i32) -> (i32, i32) {
    %c0_i32 = arith.constant 0 : i32
    %c0_i32_0 = arith.constant 0 : i32
    %c0_i32_1 = arith.constant 0 : i32
    return %c0_i32, %c0_i32_0 : i32, i32
  }
  func.func @transform_17(%arg0: i32) -> (i32, i32) {
    %c0_i32 = arith.constant 0 : i32
    %c0_i32_0 = arith.constant 0 : i32
    %c0_i32_1 = arith.constant 0 : i32
    return %c0_i32, %c0_i32_0 : i32, i32
  }
  func.func @transform_18(%arg0: i32) -> (i32, i32) {
    %c0_i32 = arith.constant 0 : i32
    %c0_i32_0 = arith.constant 0 : i32
    %c0_i32_1 = arith.constant 0 : i32
    return %c0_i32, %c0_i32_0 : i32, i32
  }
  func.func @transform_19(%arg0: i32) -> (i32, i32) {
    %c0_i32 = arith.constant 0 : i32
    %c0_i32_0 = arith.constant 0 : i32
    %c0_i32_1 = arith.constant 0 : i32
    return %c0_i32, %c0_i32_0 : i32, i32
  }
  func.func @transform_20(%arg0: i32) -> (i32, i32, i32) {
    %c0_i32 = arith.constant 0 : i32
    %c0_i32_0 = arith.constant 0 : i32
    %c0_i32_1 = arith.constant 0 : i32
    return %arg0, %c0_i32, %c0_i32_0 : i32, i32, i32
  }
}

</mosaic_0001>

<bundles_post_ra>
// kernel: tpu_custom_call.1
= control target key start
LH: loop header
LB: loop body
LE: loop exit
PB: predicated region body
PF: predicated region fallthrough
CT: control target
= control target key end

     0   :  { %s3882_s0 = inlined_call_operand.vmem [shape: bf16[512,4], index: 0, kind: input, shape index: {}]   ;;  %s3883_s1 = inlined_call_operand.vmem [shape: bf16[64,64], index: 1, kind: input, shape index: {}]   ;;  %s3884_s2 = inlined_call_operand.vmem [shape: f32[8,8,1], index: 2, kind: input, shape index: {}]   ;;  %s3885_s3 = inlined_call_operand.vmem [shape: bf16[4,32], index: 3, kind: input, shape index: {}]   ;;  %s3886_s4 = inlined_call_operand.vmem [shape: f32[1,32], index: 4, kind: input, shape index: {}]   ;;  %s3887_s5 = inlined_call_operand.vmem [shape: bf16[64,64], index: 5, kind: input, shape index: {}]   ;;  %s3888_s6 = inlined_call_operand.vmem [shape: f32[1,64], index: 6, kind: input, shape index: {}]   ;;  %s3889_s7 = inlined_call_operand.vmem [shape: bf16[32,64], index: 7, kind: input, shape index: {}]   ;;  %s3890_s8 = inlined_call_operand.vmem [shape: f32[1,64], index: 8, kind: input, shape index: {}]   ;;  %s3891_s9 = inlined_call_operand.vmem [shape: bf16[64,128], index: 9, kind: input, shape index: {}]   ;;  %s3892_s10 = inlined_call_operand.vmem [shape: f32[1,64], index: 10, kind: input, shape index: {}]   ;;  %s3893_s11 = inlined_call_operand.vmem [shape: f32[1,64], index: 11, kind: input, shape index: {}]   ;;  %s3894_s12 = inlined_call_operand.vmem [shape: f32[1,64], index: 12, kind: input, shape index: {}]   ;;  %s3895_s13 = inlined_call_operand.<no memory space> [shape: f32[1], index: 13, kind: input, shape index: {}]   ;;  %s3896_s14 = inlined_call_operand.vmem [shape: bf16[32,64], index: 14, kind: input, shape index: {}]   ;;  %s3897_s15 = inlined_call_operand.vmem [shape: f32[1,64], index: 15, kind: input, shape index: {}]   ;;  %s3898_s16 = inlined_call_operand.vmem [shape: bf16[64,128], index: 16, kind: input, shape index: {}]   ;;  %s3899_s17 = inlined_call_operand.vmem [shape: f32[1,128], index: 17, kind: input, shape index: {}]   ;;  %s3900_s18 = inlined_call_operand.vmem [shape: bf16[128,32], index: 18, kind: input, shape index: {}]   ;;  %s3901_s19 = inlined_call_operand.vmem [shape: f32[1,32], index: 19, kind: input, shape index: {}]   ;;  %s3902_s20 = inlined_call_operand.hbm [shape: f32[8,8,32], index: 20, kind: output, shape index: {}]  }
   0x1   :  { %3907 = sst [smem:[#allocation10_spill]] %s3882_s0 }
   0x2   :  { %3908 = sst [smem:[#allocation11_spill]] %s3883_s1 }
   0x3   :  { %3909 = sst [smem:[#allocation12_spill]] %s3884_s2 }
   0x4   :  { %3910 = sst [smem:[#allocation13_spill]] %s3885_s3 }
   0x5   :  { %3911 = sst [smem:[#allocation14_spill]] %s3886_s4 }
   0x6   :  { %25 = sst [smem:[#allocation2]] %s3895_s13 }
   0x7   :  { %26 = vsyncpa [#allocation4], 0 }
   0x8   :  { %28 = vsyncpa [#allocation4 + $0x1], 0  ;;  %s3340_s23 = smov 0   ;;  %s3342_s24 = smov 0  }
   0x9   :  { %s3344_s2 = smov 0   ;;  %s3346_s25 = smov 0  }
   0xa LB: > { %3912 = sst [smem:[#allocation6_spill]] %s3219_s2  ;;  %s3361_s13 = sadd.s32 4294967295, %s3223_s25   ;;  %s3223_s25 = sphi %s3346_s25, %s3924_s25   ;;  %s3219_s2 = sphi %s3344_s2, %s3926_s2   ;;  %s3215_s24 = sphi %s3342_s24, %s3928_s24   ;;  %s3211_s23 = sphi %s3340_s23, %s3927_s23  }
   0xb   : > { %s2583_s3 = sadd.s32 4294967294, %s3223_s25   ;;  %s3365_s26 = sadd.s32 1, %s3223_s25  }
   0xc   : > { %3913 = sst [smem:[#allocation7_spill]] %s3365_s26  ;;  %s476_s27 = sadd.s32 1, %s3219_s2 }
   0xd   : > { %s473_s28 = ssub.s32 %s3223_s25, %s3365_s26  ;;  %p486_p0 = scmp.ne.s32.totalorder %s3219_s2, %s3215_s24 }
   0xe   : > { %p474_p1 = scmp.eq.s32.totalorder %s473_s28, 0  ;;  %p487_p2 = scmp.eq.s32.totalorder %s3361_s13, 1 }
   0xf   : > { %p492_p3 = scmp.ne.s32.totalorder %s3215_s24, %s3211_s23  ;;  %p493_p4 = scmp.eq.s32.totalorder %s2583_s3, 1 }
  0x10   : > { %s3376_s4 = scalar_select %p474_p1, %s3219_s2, %s476_s27  }
  0x11   : > { %p3378_p5 = por %p487_p2, %p486_p0  ;;  %p3382_p6 = por %p493_p4, %p492_p3 }
  0x12   : > { %3914 = sst [smem:[#allocation8_spill]] %s3376_s4  ;;  %p2586_p7 = scmp.ge.s32.totalorder %s3223_s25, 1 }
  0x13   : > { %s3916_s30 = scalar_select %p3382_p6, 1, 0 }
  0x14   : > { %p589_p8 = scmp.lt.s32.totalorder %s3223_s25, 3 }
  0x15   : > { %3917 = sst [smem:[#allocation9_spill]] %s3916_s30 }
  0x16   : > { %p590_p9 = pnand %p2586_p7, %p589_p8 }
  0x17   : > { %s3918_s1 = sld [smem:[#allocation13_spill]] (!%p590_p9)  ;;  %vm846_vm0 = vcmask (!%p590_p9), 1041408   ;;  %s2588_s22 = sshll.u32 (!%p590_p9), %s3361_s13, 5  ;;  %v3095_v1 = vld [vmem:[%s3887_s5] sm:$0xff] (!%p590_p9)   ;;  %vm797_vm1 = vcmask (!%p590_p9), 31744   ;;  %v3096_v7 = vld [vmem:[%s3887_s5 + $0x8] sm:$0xff] (!%p590_p9)  }
  0x18   : > { %593 = sbr.rel (%p590_p9) target bundleno = 2432 (0x980), region = 100  ;;  %p658_p10 = scmp.lt.s32.totalorder (!%p590_p9), %s2588_s22, 63  ;;  %v3101_v12 = vld [vmem:[%s3887_s5 + $0x10] sm:$0xff] (!%p590_p9)   ;;  %v3102_v16 = vld [vmem:[%s3887_s5 + $0x18] sm:$0xff] (!%p590_p9)   ;;  %vm1112_vm2 = vcmask (!%p590_p9), 523264   ;;  %v3109_v24 = vld [vmem:[%s3889_s7] sm:$0xff] (!%p590_p9)  }
  0x19   : > { %s2590_s28 = sshll.u32 (!%p590_p9), %s3361_s13, 2  ;;  %v3110_v25 = vld [vmem:[%s3889_s7 + $0x8] sm:$0xff] (!%p590_p9)   ;;  %v3111_v26 = vld [vmem:[%s3891_s9] sm:$0xff] (!%p590_p9)   ;;  %v3113_v28 = vld [vmem:[%s3891_s9 + $0x10] sm:$0xff] (!%p590_p9)   ;;  %s3921_s0 = sld [smem:[#allocation14_spill]] (!%p590_p9)  ;;  %vm1197_vm3 = vcmask (!%p590_p9), 261120  }
  0x1a   : > { %p664_p11 = scmp.lt.s32.totalorder (!%p590_p9), %s2590_s28, 7  ;;  %v3112_v27 = vld [vmem:[%s3891_s9 + $0x8] sm:$0xff] (!%p590_p9)   ;;  %v3114_v29 = vld [vmem:[%s3891_s9 + $0x18] sm:$0xff] (!%p590_p9)   ;;  %vm3226_vm4 = vmmov (!%p590_p9), 0   ;;  %s1589_s27 = sld [smem:[#allocation2]] (!%p590_p9) }
  0x1b   : > { %s654_s30 = sand.u32 (!%p590_p9), 1, %s3215_s24  }
  0x1d   : > { %v709_v0 = vld [vmem:[%s3918_s1] sm:$0x3] (!%p590_p9)  ;;  %s3919_s1 = sld [smem:[#allocation10_spill]] (!%p590_p9) }
  0x1e   : > { %3038 = vmatprep.subr.msk.bf16.mxu0 (!%p590_p9), %vm846_vm0, %v709_v0  ;;  %v848_v2 = vsel (!%p590_p9), %vm846_vm0, %v709_v0, 0  ;;  %3039 = vmatprep.subr.msk.bf16.mxu1 (!%p590_p9), %vm846_vm0, %v709_v0 }
  0x1f   : > { %2807 = vmatpush3.bf16.msra.mxu0 %v848_v2  ;;  %3037 = vmatpush3.bf16.msra.mxu1 %v848_v2  ;;  %s3930_s22 = smov (!%p658_p10, %s2588_s22), 63  ;;  %s3932_s28 = smov (!%p664_p11, %s2590_s28), 7  ;;  %v3471_v30 = vld [vmem:[%s3921_s0] ss:$0 sm:$0xff] }
  0x20   : > { %2840 = vmatprep.subr.bf16.mxu1 %v3095_v1  ;;  %s2589_s4 = sshll.u32 %s3930_s22, 2  ;;  %s2591_s3 = sshll.u32 %s3932_s28, 2  ;;  %2888 = vmatprep.subr.bf16.mxu0 %v3111_v26 }
  0x21   : > { %s2593_s0 = sshll.u32 %s3932_s28, 3 }
  0x23   : > { %s3399_s2 = scalar_lea.vmem %s3919_s1, %s2589_s4  ;;  %s3920_s4 = sld [smem:[#allocation11_spill]] }
  0x24   : > { %v3087_v3 = vld [vmem:[%s3399_s2] sm:$0xff]   ;;  %v3088_v4 = vld [vmem:[%s3399_s2 + $0x8] sm:$0xff]   ;;  %v3089_v5 = vld [vmem:[%s3399_s2 + $0x10] sm:$0xff]   ;;  %s3922_s1 = sld [smem:[#allocation12_spill]] }
  0x25   : > { %2808 = vmatprep.mubr.msk.bf16.mxu0 %vm797_vm1, %v3087_v3  ;;  %v3092_v6 = vld [vmem:[%s3399_s2 + $0x60] sm:$0xff]   ;;  %v3090_v8 = vld [vmem:[%s3399_s2 + $0x18] sm:$0xff]   ;;  %v3094_v9 = vld [vmem:[%s3399_s2 + $0x68] sm:$0xff]  }
  0x26   : > { %2809 = vmatmul.mubr.msk.bf16.vlgmr.msra.gmra.mrb[0].mxu0 %vm797_vm1, %v3088_v4  ;;  %2832 = vmatprep.mubr.msk.bf16.mxu1 %vm797_vm1, %v3092_v6  ;;  %v3091_v10 = vld [vmem:[%s3399_s2 + $0x20] sm:$0xff]   ;;  %v3098_v11 = vld [vmem:[%s3399_s2 + $0x70] sm:$0xff]   ;;  %v3100_v13 = vld [vmem:[%s3399_s2 + $0x78] sm:$0xff]  }
  0x27   : > { %2812 = vmatprep.mubr.msk.bf16.mxu0 %vm797_vm1, %v3089_v5  ;;  %2833 = vmatmul.mubr.msk.bf16.vlgmr.msra.gmra.mrb[0].mxu1 %vm797_vm1, %v3094_v9  ;;  %v3093_v15 = vld [vmem:[%s3399_s2 + $0x28] sm:$0xff]   ;;  %v3097_v17 = vld [vmem:[%s3399_s2 + $0x30] sm:$0xff]   ;;  %v3099_v19 = vld [vmem:[%s3399_s2 + $0x38] sm:$0xff]  }
  0x28   : > { %2841 = vmatpush3.bf16.msra.mxu1 %v3095_v1  ;;  %2836 = vmatprep.mubr.msk.bf16.mxu1 %vm797_vm1, %v3098_v11  ;;  %v3103_v20 = vld [vmem:[%s3399_s2 + $0x40] sm:$0xff]   ;;  %v3105_v21 = vld [vmem:[%s3399_s2 + $0x48] sm:$0xff]   ;;  %v3107_v22 = vld [vmem:[%s3399_s2 + $0x50] sm:$0xff]  }
  0x29   : > { %2842 = vmatprep.subr.bf16.mxu1 %v3096_v7  ;;  %s667_s22 = scalar_lea.vmem %s3920_s4, %s2591_s3  ;;  %v3108_v23 = vld [vmem:[%s3399_s2 + $0x58] sm:$0xff]   ;;  %2889 = vmatpush3.bf16.msra.mxu0 %v3111_v26  ;;  %s2587_s3 = sshll.u32 %s654_s30, 5 }
  0x2a   : > { %v3104_v14 = vld [vmem:[%s667_s22] sm:$0xff]   ;;  %v3106_v18 = vld [vmem:[%s667_s22 + $0x8] sm:$0xff]   ;;  %2890 = vmatprep.subr.bf16.mxu0 %v3112_v27  ;;  %s673_s4 = scalar_lea.vmem %s3922_s1, %s2593_s0  ;;  %s3228_s0 = smov 64  }
  0x2b   : > { %s656_s2 = scalar_lea.vmem [#allocation3], %s2587_s3  ;;  %s3229_s3 = smov [#allocation3]  }
  0x2c   : > { %2843 = vmatpush3.bf16.msra.mxu1 %v3096_v7  ;;  %s2497_s1 = sshll.u32 %s656_s2, 4  ;;  %s3831_s1 = int_to_ptr.vmem [resolvable:$true] %s2497_s1 }
  0x2d   : > { %2844 = vmatprep.subr.bf16.mxu1 %v3101_v12  ;;  %2891 = vmatpush3.bf16.msra.mxu0 %v3112_v27  ;;  %s3161_s26 = scalar_lea.vmem %s3831_s1, 512 }
  0x2e   : > { %2813 = vmatmul.mubr.msk.bf16.gmra.mrb[4].mxu0 %vm797_vm1, %v3090_v8  ;;  %2892 = vmatprep.subr.bf16.mxu0 %v3113_v28  ;;  %p3162_p12 = scmp.ne.s32.totalorder %s3831_s1, %s3161_s26 }
  0x2f   : > { %2816 = vmatprep.mubr.msk.bf16.mxu0 %vm797_vm1, %v3091_v10  ;;  %2837 = vmatmul.mubr.msk.bf16.gmra.mrb[4].mxu1 %vm797_vm1, %v3100_v13 }
  0x30   : > { %2845 = vmatpush3.bf16.msra.mxu1 %v3101_v12  ;;  %2848 = vmatprep.mubr.msk.bf16.mxu1 %vm1112_vm2, %v3104_v14  ;;  %p3163_p13 = pnand %p3162_p12, %p3378_p5 }
  0x31   : > { %2846 = vmatprep.subr.bf16.mxu1 %v3102_v16  ;;  %2893 = vmatpush3.bf16.msra.mxu0 %v3113_v28 }
  0x32   : > { %2894 = vmatprep.subr.bf16.mxu0 %v3114_v29  ;;  %p3164_p0 = pneg %p3163_p13 }
  0x34   : > { %2847 = vmatpush3.bf16.msra.mxu1 %v3102_v16 }
  0x35   : > { %2852 = vmatprep.subr.bf16.mxu1 %v3109_v24  ;;  %2895 = vmatpush3.bf16.msra.mxu0 %v3114_v29  ;;  %v2627_v29 = vld [vmem:[%s3888_s6] ss:$0 sm:$0xff] }
  0x36   : > { %2817 = vmatmul.mubr.msk.bf16.gmra.mrb[8].mxu0 %vm797_vm1, %v3093_v15 }
  0x37   : > { %2820 = vmatprep.mubr.msk.bf16.mxu0 %vm797_vm1, %v3097_v17  ;;  %2849 = vmatmul.mubr.msk.bf16.vlgmr.msra.gmra.mrb[8].mxu1 %vm1112_vm2, %v3106_v18 }
  0x38   : > { %2853 = vmatpush3.bf16.msra.mxu1 %v3109_v24 }
  0x39   : > { %2854 = vmatprep.subr.bf16.mxu1 %v3110_v25 }
  0x3c   : > { %2855 = vmatpush3.bf16.msra.mxu1 %v3110_v25 }
  0x3e   : > { %2821 = vmatmul.mubr.msk.bf16.gmra.mrb[12].mxu0 %vm797_vm1, %v3099_v19 }
  0x3f   : > { %2824 = vmatprep.mubr.msk.bf16.mxu0 %vm797_vm1, %v3103_v20 }
  0x46   : > { %2825 = vmatmul.mubr.msk.bf16.gmra.mrb[16].mxu0 %vm797_vm1, %v3105_v21 }
  0x47   : > { %2828 = vmatprep.mubr.msk.bf16.mxu0 %vm797_vm1, %v3107_v22 }
  0x4e   : > { %2829 = vmatmul.mubr.msk.bf16.gmra.mrb[20].mxu0 %vm797_vm1, %v3108_v23 }
  0xf9   : > { %v2810_v31 = vpop.f32.mrb[0].mxu0 }
  0xfa   : > { %v893_v32 = vadd.f32 %v2810_v31, %v3471_v30  ;;  %v884_v33 = vpop.f32.mrb[1].mxu0  ;;  %v2834_v43 = vpop.f32.mrb[0].mxu1 }
  0xfb   : > { %v885_v34 = vadd.f32 %v3471_v30, %v884_v33  ;;  %v2811_v35 = vpop.f32.mrb[2].mxu0  ;;  %v989_v45 = vadd.f32 %v2834_v43, %v3471_v30  ;;  %v980_v46 = vpop.f32.mrb[1].mxu1 }
  0xfc   : > { %v896_v36 = vadd.f32 %v2811_v35, %v3471_v30  ;;  %v887_v37 = vpop.f32.mrb[3].mxu0  ;;  %v1013_v39 = vmax.f32 %v893_v32, 0.0  ;;  %v981_v49 = vadd.f32 %v3471_v30, %v980_v46  ;;  %v2835_v50 = vpop.f32.mrb[2].mxu1 }
  0xfd   : > { %v888_v38 = vadd.f32 %v3471_v30, %v887_v37  ;;  %v1011_v41 = vmax.f32 %v885_v34, 0.0  ;;  %v1037_v53 = vmax.f32 %v989_v45, 0.0  ;;  %v992_v54 = vadd.f32 %v2835_v50, %v3471_v30  ;;  %v983_v55 = vpop.f32.mrb[3].mxu1 }
  0xfe   : > { %v1014_v40 = vmax.f32 %v896_v36, 0.0  ;;  %v1035_v58 = vmax.f32 %v981_v49, 0.0  ;;  %v984_v59 = vadd.f32 %v3471_v30, %v983_v55 }
  0xff   : > { %v1012_v42 = vmax.f32 %v888_v38, 0.0  ;;  %v1038_v62 = vmax.f32 %v992_v54, 0.0 }
 0x100   : > { %v3477_v44 = vpack.c.bf16 %v1014_v40, %v1013_v39  ;;  %v1036_v0 = vmax.f32 %v984_v59, 0.0 }
 0x101   : > { %v3480_v47 = vpack.c.bf16 %v1012_v42, %v1011_v41  ;;  %v2814_v48 = vpop.f32.mrb[4].mxu0  ;;  %v3493_v3 = vpack.c.bf16 %v1038_v62, %v1037_v53 }
 0x102   : > { %v909_v51 = vadd.f32 %v2814_v48, %v3471_v30  ;;  %v900_v52 = vpop.f32.mrb[5].mxu0  ;;  %v3495_v6 = vpack.c.bf16 %v1036_v0, %v1035_v58  ;;  %v2838_v7 = vpop.f32.mrb[4].mxu1 }
 0x103   : > { %v901_v56 = vadd.f32 %v3471_v30, %v900_v52  ;;  %v2815_v57 = vpop.f32.mrb[6].mxu0  ;;  %2856 = vmatprep.mubr.msk.bf16.mxu1 %vm1197_vm3, %v3480_v47  ;;  %v1005_v9 = vadd.f32 %v2838_v7, %v3471_v30  ;;  %v996_v10 = vpop.f32.mrb[5].mxu1 }
 0x104   : > { %v912_v60 = vadd.f32 %v2815_v57, %v3471_v30  ;;  %v903_v61 = vpop.f32.mrb[7].mxu0  ;;  %2857 = vmatmul.mubr.msk.bf16.vlgmr.msra.gmra.mrb[12].mxu1 %vm1197_vm3, %v3477_v44  ;;  %v1017_v1 = vmax.f32 %v909_v51, 0.0  ;;  %v997_v13 = vadd.f32 %v3471_v30, %v996_v10  ;;  %v2839_v14 = vpop.f32.mrb[6].mxu1 }
 0x105   : > { %v904_v63 = vadd.f32 %v3471_v30, %v903_v61  ;;  %v1015_v4 = vmax.f32 %v901_v56, 0.0  ;;  %v1041_v17 = vmax.f32 %v1005_v9, 0.0  ;;  %v1008_v18 = vadd.f32 %v2839_v14, %v3471_v30  ;;  %v999_v19 = vpop.f32.mrb[7].mxu1 }
 0x106   : > { %v1018_v2 = vmax.f32 %v912_v60, 0.0  ;;  %v1039_v22 = vmax.f32 %v997_v13, 0.0  ;;  %v1000_v23 = vadd.f32 %v3471_v30, %v999_v19 }
 0x107   : > { %v1016_v5 = vmax.f32 %v904_v63, 0.0  ;;  %v1042_v26 = vmax.f32 %v1008_v18, 0.0 }
 0x108   : > { %v3497_v8 = vpack.c.bf16 %v1018_v2, %v1017_v1  ;;  %v1040_v28 = vmax.f32 %v1000_v23, 0.0 }
 0x109   : > { %v3500_v11 = vpack.c.bf16 %v1016_v5, %v1015_v4  ;;  %v2818_v12 = vpop.f32.mrb[8].mxu0  ;;  %v3516_v33 = vpack.c.bf16 %v1042_v26, %v1041_v17 }
 0x10a   : > { %v925_v15 = vadd.f32 %v2818_v12, %v3471_v30  ;;  %v916_v16 = vpop.f32.mrb[9].mxu0  ;;  %v3518_v36 = vpack.c.bf16 %v1040_v28, %v1039_v22  ;;  %v2850_v37 = vpop.f32.mrb[8].mxu1 }
 0x10b   : > { %v917_v20 = vadd.f32 %v3471_v30, %v916_v16  ;;  %v2819_v21 = vpop.f32.mrb[10].mxu0  ;;  %2860 = vmatprep.mubr.msk.bf16.mxu1 %vm1197_vm3, %v3500_v11  ;;  %v1162_v39 = vadd.f32 %v2850_v37, %v2627_v29  ;;  %v1153_v40 = vpop.f32.mrb[9].mxu1 }
 0x10c   : > { %v928_v24 = vadd.f32 %v2819_v21, %v3471_v30  ;;  %v919_v25 = vpop.f32.mrb[11].mxu0  ;;  %2861 = vmatmul.mubr.msk.bf16.gmra.mrb[16].mxu1 %vm1197_vm3, %v3497_v8  ;;  %v1021_v31 = vmax.f32 %v925_v15, 0.0  ;;  %v1154_v43 = vadd.f32 %v2627_v29, %v1153_v40  ;;  %v2851_v45 = vpop.f32.mrb[10].mxu1 }
 0x10d   : > { %v920_v27 = vadd.f32 %v3471_v30, %v919_v25  ;;  %v1019_v34 = vmax.f32 %v917_v20, 0.0  ;;  %v1170_v49 = vmax.f32 %v1162_v39, 0.0  ;;  %v1165_v50 = vadd.f32 %v2851_v45, %v2627_v29  ;;  %v1156_v51 = vpop.f32.mrb[11].mxu1 }
 0x10e   : > { %v1022_v32 = vmax.f32 %v928_v24, 0.0  ;;  %v1168_v54 = vmax.f32 %v1154_v43, 0.0  ;;  %v1157_v55 = vadd.f32 %v2627_v29, %v1156_v51 }
 0x10f   : > { %v1020_v35 = vmax.f32 %v920_v27, 0.0  ;;  %v1171_v58 = vmax.f32 %v1165_v50, 0.0 }
 0x110   : > { %v3520_v38 = vpack.c.bf16 %v1022_v32, %v1021_v31  ;;  %v1169_v60 = vmax.f32 %v1157_v55, 0.0 }
 0x111   : > { %v3522_v41 = vpack.c.bf16 %v1020_v35, %v1019_v34  ;;  %v2822_v42 = vpop.f32.mrb[12].mxu0  ;;  %v1173_v63 = vpack.c.bf16 %v1171_v58, %v1170_v49 }
 0x112   : > { %v941_v46 = vadd.f32 %v2822_v42, %v3471_v30  ;;  %v932_v48 = vpop.f32.mrb[13].mxu0  ;;  %v1172_v2 = vpack.c.bf16 %v1169_v60, %v1168_v54  ;;  %v3583_v42 = vld [vmem:[%s3890_s8] ss:$0 sm:$0xff] }
 0x113   : > { %v933_v52 = vadd.f32 %v3471_v30, %v932_v48  ;;  %v2823_v53 = vpop.f32.mrb[14].mxu0  ;;  %2864 = vmatprep.mubr.msk.bf16.mxu1 %vm1197_vm3, %v3522_v41 }
 0x114   : > { %v944_v56 = vadd.f32 %v2823_v53, %v3471_v30  ;;  %v935_v57 = vpop.f32.mrb[15].mxu0  ;;  %2865 = vmatmul.mubr.msk.bf16.gmra.mrb[20].mxu1 %vm1197_vm3, %v3520_v38  ;;  %v1025_v61 = vmax.f32 %v941_v46, 0.0  ;;  %2896 = vmatprep.mubr.msk.bf16.mxu0 %vm1112_vm2, %v1172_v2 }
 0x115   : > { %v936_v59 = vadd.f32 %v3471_v30, %v935_v57  ;;  %v1023_v0 = vmax.f32 %v933_v52, 0.0  ;;  %2897 = vmatmul.mubr.msk.bf16.vlgmr.msra.gmra.mrb[24].mxu0 %vm1112_vm2, %v1173_v63 }
 0x116   : > { %v1026_v62 = vmax.f32 %v944_v56, 0.0 }
 0x117   : > { %v1024_v1 = vmax.f32 %v936_v59, 0.0 }
 0x118   : > { %v3532_v4 = vpack.c.bf16 %v1026_v62, %v1025_v61 }
 0x119   : > { %v3534_v5 = vpack.c.bf16 %v1024_v1, %v1023_v0  ;;  %v2826_v7 = vpop.f32.mrb[16].mxu0 }
 0x11a   : > { %v957_v9 = vadd.f32 %v2826_v7, %v3471_v30  ;;  %v948_v10 = vpop.f32.mrb[17].mxu0 }
 0x11b   : > { %v949_v12 = vadd.f32 %v3471_v30, %v948_v10  ;;  %v2827_v13 = vpop.f32.mrb[18].mxu0  ;;  %2868 = vmatprep.mubr.msk.bf16.mxu1 %vm1197_vm3, %v3534_v5 }
 0x11c   : > { %v960_v14 = vadd.f32 %v2827_v13, %v3471_v30  ;;  %v951_v15 = vpop.f32.mrb[19].mxu0  ;;  %2869 = vmatmul.mubr.msk.bf16.gmra.mrb[24].mxu1 %vm1197_vm3, %v3532_v4  ;;  %v1029_v17 = vmax.f32 %v957_v9, 0.0 }
 0x11d   : > { %v952_v16 = vadd.f32 %v3471_v30, %v951_v15  ;;  %v1027_v19 = vmax.f32 %v949_v12, 0.0 }
 0x11e   : > { %v1030_v18 = vmax.f32 %v960_v14, 0.0 }
 0x11f   : > { %v1028_v20 = vmax.f32 %v952_v16, 0.0 }
 0x120   : > { %v3546_v21 = vpack.c.bf16 %v1030_v18, %v1029_v17 }
 0x121   : > { %v3548_v22 = vpack.c.bf16 %v1028_v20, %v1027_v19  ;;  %v2830_v23 = vpop.f32.mrb[20].mxu0 }
 0x122   : > { %v973_v24 = vadd.f32 %v2830_v23, %v3471_v30  ;;  %v964_v25 = vpop.f32.mrb[21].mxu0 }
 0x123   : > { %v965_v26 = vadd.f32 %v3471_v30, %v964_v25  ;;  %v2831_v27 = vpop.f32.mrb[22].mxu0  ;;  %2872 = vmatprep.mubr.msk.bf16.mxu1 %vm1197_vm3, %v3548_v22 }
 0x124   : > { %v976_v28 = vadd.f32 %v2831_v27, %v3471_v30  ;;  %v967_v29 = vpop.f32.mrb[23].mxu0  ;;  %2873 = vmatmul.mubr.msk.bf16.gmra.mrb[28].mxu1 %vm1197_vm3, %v3546_v21  ;;  %v1033_v32 = vmax.f32 %v973_v24, 0.0 }
 0x125   : > { %v968_v31 = vadd.f32 %v3471_v30, %v967_v29  ;;  %v1031_v35 = vmax.f32 %v965_v26, 0.0  ;;  %v3225_v30 = vmov 0.0  }
 0x126   : > { %v1034_v34 = vmax.f32 %v976_v28, 0.0  ;;  %2900 = vmatprep.subr.bf16.mxu1 %v3225_v30  ;;  %2912 = vmatprep.subr.bf16.mxu0 %v3225_v30 }
 0x127   : > { %v1032_v37 = vmax.f32 %v968_v31, 0.0  ;;  %2920 = vmatprep.mubr.msk.bf16.mxu0 %vm3226_vm4, %v3225_v30 }
 0x128   : > { %v3558_v39 = vpack.c.bf16 %v1034_v34, %v1033_v32 }
 0x129   : > { %v3560_v40 = vpack.c.bf16 %v1032_v37, %v1031_v35  ;;  %v3606_v35 = vld [vmem:[%s3892_s10] ss:$0 sm:$0xff] }
 0x12b   : > { %2876 = vmatprep.mubr.msk.bf16.mxu1 %vm1197_vm3, %v3560_v40 }
 0x12c   : > { %2877 = vmatmul.mubr.msk.bf16.gmra.mrb[32].mxu1 %vm1197_vm3, %v3558_v39 }
 0x12d   : > { %2880 = vmatprep.mubr.msk.bf16.mxu1 %vm1197_vm3, %v3495_v6 }
 0x134   : > { %2881 = vmatmul.mubr.msk.bf16.gmra.mrb[36].mxu1 %vm1197_vm3, %v3493_v3 }
 0x135   : > { %2884 = vmatprep.mubr.msk.bf16.mxu1 %vm1197_vm3, %v3518_v36 }
 0x13c   : > { %2885 = vmatmul.mubr.msk.bf16.gmra.mrb[40].mxu1 %vm1197_vm3, %v3516_v33 }
 0x13d   : > { %2908 = vmatprep.mubr.msk.bf16.mxu1 %vm3226_vm4, %v3225_v30 }
 0x1d7   : > { %v2858_v43 = vpop.f32.mrb[12].mxu1 }
 0x1d8   : > { %v1289_v45 = vadd.f32 %v2858_v43, %v3583_v42  ;;  %v1280_v46 = vpop.f32.mrb[13].mxu1 }
 0x1d9   : > { %v1281_v48 = vadd.f32 %v3583_v42, %v1280_v46  ;;  %v2859_v49 = vpop.f32.mrb[14].mxu1 }
 0x1da   : > { %v1292_v50 = vadd.f32 %v2859_v49, %v3583_v42  ;;  %v1283_v51 = vpop.f32.mrb[15].mxu1  ;;  %v1409_v53 = vmax.f32 %v1289_v45, 0.0 }
 0x1db   : > { %v1284_v52 = vadd.f32 %v3583_v42, %v1283_v51  ;;  %v1407_v55 = vmax.f32 %v1281_v48, 0.0 }
 0x1dc   : > { %v1410_v54 = vmax.f32 %v1292_v50, 0.0 }
 0x1dd   : > { %v1408_v56 = vmax.f32 %v1284_v52, 0.0 }
 0x1de   : > { %v1574_v57 = vpack.c.bf16 %v1410_v54, %v1409_v53 }
 0x1df   : > { %v1573_v58 = vpack.c.bf16 %v1408_v56, %v1407_v55  ;;  %v2862_v59 = vpop.f32.mrb[16].mxu1 }
 0x1e0   : > { %v1305_v60 = vadd.f32 %v2862_v59, %v3583_v42  ;;  %v1296_v61 = vpop.f32.mrb[17].mxu1  ;;  %v1598_v23 = vsel %vm1112_vm2, %v1574_v57, 0 }
 0x1e1   : > { %v1595_v62 = vsel %vm1112_vm2, %v1573_v58, 0  ;;  %v1297_v63 = vadd.f32 %v3583_v42, %v1296_v61  ;;  %v2863_v0 = vpop.f32.mrb[18].mxu1 }
 0x1e2   : > { %2901 = vmatpush3.bf16.xpose.msra.mxu1 %v1595_v62  ;;  %v1308_v1 = vadd.f32 %v2863_v0, %v3583_v42  ;;  %v1299_v2 = vpop.f32.mrb[19].mxu1  ;;  %v1413_v9 = vmax.f32 %v1305_v60, 0.0 }
 0x1e3   : > { %v1300_v7 = vadd.f32 %v3583_v42, %v1299_v2  ;;  %2902 = vmatprep.subr.bf16.mxu1 %v3225_v30  ;;  %v1411_v12 = vmax.f32 %v1297_v63, 0.0 }
 0x1e4   : > { %v1414_v10 = vmax.f32 %v1308_v1, 0.0  ;;  %v3627_v1 = vld [vmem:[%s3894_s12] ss:$0 sm:$0xff] }
 0x1e5   : > { %v1412_v13 = vmax.f32 %v1300_v7, 0.0 }
 0x1e6   : > { %v1576_v14 = vpack.c.bf16 %v1414_v10, %v1413_v9 }
 0x1e7   : > { %v1575_v15 = vpack.c.bf16 %v1412_v13, %v1411_v12  ;;  %v2866_v16 = vpop.f32.mrb[20].mxu1 }
 0x1e8   : > { %v1321_v17 = vadd.f32 %v2866_v16, %v3583_v42  ;;  %v1312_v18 = vpop.f32.mrb[21].mxu1  ;;  %v3601_v32 = vpop.f32.mrb[24].mxu0  ;;  %v1604_v16 = vsel %vm1112_vm2, %v1576_v14, 0 }
 0x1e9   : > { %v1313_v19 = vadd.f32 %v3583_v42, %v1312_v18  ;;  %v2867_v20 = vpop.f32.mrb[22].mxu1  ;;  %v3608_v37 = vpop.f32.mrb[25].mxu0  ;;  %v1601_v51 = vsel %vm1112_vm2, %v1575_v15, 0 }
 0x1ea   : > { %v1324_v24 = vadd.f32 %v2867_v20, %v3583_v42  ;;  %v1315_v25 = vpop.f32.mrb[23].mxu1  ;;  %2903 = vmatpush3.bf16.xpose.msra.mxu1 %v1598_v23  ;;  %v1417_v27 = vmax.f32 %v1321_v17, 0.0  ;;  %v3610_v46 = vpop.f32.mrb[26].mxu0  ;;  %v1533_v55 = vadd.f32 %v3606_v35, %v3608_v37 }
 0x1eb   : > { %v1316_v26 = vadd.f32 %v3583_v42, %v1315_v25  ;;  %2904 = vmatprep.subr.bf16.mxu1 %v3225_v30  ;;  %v1415_v29 = vmax.f32 %v1313_v19, 0.0  ;;  %v3613_v50 = vpop.f32.mrb[27].mxu0 }
 0x1ec   : > { %v1418_v28 = vmax.f32 %v1324_v24, 0.0  ;;  %v1537_v63 = vmax.f32 %v1533_v55, 0.0 }
 0x1ed   : > { %v1416_v31 = vmax.f32 %v1316_v26, 0.0 }
 0x1ee   : > { %v1578_v34 = vpack.c.bf16 %v1418_v28, %v1417_v27  ;;  %v1565_v13 = vmul.f32 %v3627_v1, %v1537_v63 }
 0x1ef   : > { %v1577_v43 = vpack.c.bf16 %v1416_v31, %v1415_v29  ;;  %v2870_v45 = vpop.f32.mrb[24].mxu1 }
 0x1f0   : > { %v1337_v48 = vadd.f32 %v2870_v45, %v3583_v42  ;;  %v1328_v49 = vpop.f32.mrb[25].mxu1  ;;  %v1653_v17 = vsel %vm1112_vm2, %v1578_v34, 0  ;;  %v1569_v26 = vpack.c.bf16 %v1565_v13, %v1565_v13 }
 0x1f1   : > { %v1650_v52 = vsel %vm1112_vm2, %v1577_v43, 0  ;;  %v1329_v53 = vadd.f32 %v3583_v42, %v1328_v49  ;;  %v2871_v54 = vpop.f32.mrb[26].mxu1 }
 0x1f2   : > { %2905 = vmatpush3.bf16.xpose.msra.mxu1 %v1601_v51  ;;  %2913 = vmatpush3.bf16.xpose.msra.mxu0 %v1650_v52  ;;  %v1340_v56 = vadd.f32 %v2871_v54, %v3583_v42  ;;  %v1331_v57 = vpop.f32.mrb[27].mxu1  ;;  %v1421_v59 = vmax.f32 %v1337_v48, 0.0  ;;  %v1534_v54 = vadd.f32 %v3606_v35, %v3613_v50 }
 0x1f3   : > { %v1332_v58 = vadd.f32 %v3583_v42, %v1331_v57  ;;  %2906 = vmatprep.subr.bf16.mxu1 %v3225_v30  ;;  %2914 = vmatprep.subr.bf16.mxu0 %v3225_v30  ;;  %v1419_v61 = vmax.f32 %v1329_v53, 0.0 }
 0x1f4   : > { %v1422_v60 = vmax.f32 %v1340_v56, 0.0 }
 0x1f5   : > { %v1420_v62 = vmax.f32 %v1332_v58, 0.0 }
 0x1f6   : > { %v1580_v0 = vpack.c.bf16 %v1422_v60, %v1421_v59 }
 0x1f7   : > { %v1579_v2 = vpack.c.bf16 %v1420_v62, %v1419_v61  ;;  %v2874_v7 = vpop.f32.mrb[28].mxu1  ;;  %v1538_v62 = vmax.f32 %v1534_v54, 0.0 }
 0x1f8   : > { %v1353_v9 = vadd.f32 %v2874_v7, %v3583_v42  ;;  %v1344_v10 = vpop.f32.mrb[29].mxu1 }
 0x1f9   : > { %v1345_v12 = vadd.f32 %v3583_v42, %v1344_v10  ;;  %v2875_v15 = vpop.f32.mrb[30].mxu1  ;;  %v1656_v43 = vsel %vm1112_vm2, %v1579_v2, 0  ;;  %v1659_v10 = vsel %vm1112_vm2, %v1580_v0, 0 }
 0x1fa   : > { %v1356_v18 = vadd.f32 %v2875_v15, %v3583_v42  ;;  %v1347_v19 = vpop.f32.mrb[31].mxu1  ;;  %2907 = vmatpush3.bf16.xpose.msra.mxu1 %v1604_v16  ;;  %2915 = vmatpush3.bf16.xpose.msra.mxu0 %v1653_v17  ;;  %v1425_v23 = vmax.f32 %v1353_v9, 0.0  ;;  %v1566_v16 = vmul.f32 %v3627_v1, %v1538_v62 }
 0x1fb   : > { %v1348_v20 = vadd.f32 %v3583_v42, %v1347_v19  ;;  %2916 = vmatprep.subr.bf16.mxu0 %v3225_v30  ;;  %2924 = vmatprep.subr.bf16.mxu1 %v3225_v30  ;;  %v1423_v25 = vmax.f32 %v1345_v12, 0.0 }
 0x1fc   : > { %v1426_v24 = vmax.f32 %v1356_v18, 0.0 }
 0x1fd   : > { %v1424_v27 = vmax.f32 %v1348_v20, 0.0 }
 0x1fe   : > { %v1582_v28 = vpack.c.bf16 %v1426_v24, %v1425_v23  ;;  %v1570_v24 = vpack.c.bf16 %v1566_v16, %v1566_v16 }
 0x1ff   : > { %v1581_v14 = vpack.c.bf16 %v1424_v27, %v1423_v25  ;;  %v2878_v29 = vpop.f32.mrb[32].mxu1 }
 0x200   : > { %v1369_v31 = vadd.f32 %v2878_v29, %v3583_v42  ;;  %v1360_v34 = vpop.f32.mrb[33].mxu1  ;;  %v1708_v12 = vsel %vm1112_vm2, %v1582_v28, 0 }
 0x201   : > { %2909 = vmatmul.mubr.msk.bf16.vlgmr.msra.gmra.mrb[44].mxu1 %vm1112_vm2, %v1569_v26  ;;  %v1705_v45 = vsel %vm1112_vm2, %v1581_v14, 0  ;;  %v1361_v48 = vadd.f32 %v3583_v42, %v1360_v34  ;;  %v2879_v49 = vpop.f32.mrb[34].mxu1 }
 0x202   : > { %2917 = vmatpush3.bf16.xpose.msra.mxu0 %v1656_v43  ;;  %2925 = vmatpush3.bf16.xpose.msra.mxu1 %v1705_v45  ;;  %v1372_v51 = vadd.f32 %v2879_v49, %v3583_v42  ;;  %v1363_v52 = vpop.f32.mrb[35].mxu1  ;;  %v1429_v55 = vmax.f32 %v1369_v31, 0.0 }
 0x203   : > { %v1364_v53 = vadd.f32 %v3583_v42, %v1363_v52  ;;  %2918 = vmatprep.subr.bf16.mxu0 %v3225_v30  ;;  %2926 = vmatprep.subr.bf16.mxu1 %v3225_v30  ;;  %v1427_v57 = vmax.f32 %v1361_v48, 0.0  ;;  %v1535_v48 = vadd.f32 %v3601_v32, %v3606_v35 }
 0x204   : > { %v1430_v56 = vmax.f32 %v1372_v51, 0.0  ;;  %2932 = vmatprep.mubr.msk.bf16.mxu1 %vm3226_vm4, %v3225_v30 }
 0x205   : > { %v1428_v58 = vmax.f32 %v1364_v53, 0.0 }
 0x206   : > { %v1584_v59 = vpack.c.bf16 %v1430_v56, %v1429_v55  ;;  %v1539_v56 = vmax.f32 %v1535_v48, 0.0 }
 0x207   : > { %v1583_v60 = vpack.c.bf16 %v1428_v58, %v1427_v57  ;;  %v2882_v61 = vpop.f32.mrb[36].mxu1 }
 0x208   : > { %v1385_v63 = vadd.f32 %v2882_v61, %v3583_v42  ;;  %v1376_v2 = vpop.f32.mrb[37].mxu1  ;;  %v1714_v58 = vsel %vm1112_vm2, %v1584_v59, 0  ;;  %v1536_v59 = vadd.f32 %v3610_v46, %v3606_v35 }
 0x209   : > { %v1377_v7 = vadd.f32 %v3583_v42, %v1376_v2  ;;  %v2883_v9 = vpop.f32.mrb[38].mxu1  ;;  %v1711_v31 = vsel %vm1112_vm2, %v1583_v60, 0 }
 0x20a   : > { %v1388_v13 = vadd.f32 %v2883_v9, %v3583_v42  ;;  %v1379_v15 = vpop.f32.mrb[39].mxu1  ;;  %2919 = vmatpush3.bf16.xpose.msra.mxu0 %v1659_v10  ;;  %2927 = vmatpush3.bf16.xpose.msra.mxu1 %v1708_v12  ;;  %v1433_v18 = vmax.f32 %v1385_v63, 0.0  ;;  %v1540_v63 = vmax.f32 %v1536_v59, 0.0  ;;  %v2024_v59 = vld [vmem:[%s673_s4 + $0x8] sm:$0xff] }
 0x20b   : > { %v1380_v17 = vadd.f32 %v3583_v42, %v1379_v15  ;;  %2928 = vmatprep.subr.bf16.mxu1 %v3225_v30  ;;  %2936 = vmatprep.subr.bf16.mxu0 %v3225_v30  ;;  %v1431_v20 = vmax.f32 %v1377_v7, 0.0 }
 0x20c   : > { %v1434_v19 = vmax.f32 %v1388_v13, 0.0 }
 0x20d   : > { %v1432_v23 = vmax.f32 %v1380_v17, 0.0 }
 0x20e   : > { %v1586_v0 = vpack.c.bf16 %v1434_v19, %v1433_v18 }
 0x20f   : > { %v1585_v25 = vpack.c.bf16 %v1432_v23, %v1431_v20  ;;  %v2886_v26 = vpop.f32.mrb[40].mxu1 }
 0x210   : > { %v1401_v27 = vadd.f32 %v2886_v26, %v3583_v42  ;;  %v1392_v28 = vpop.f32.mrb[41].mxu1  ;;  %v1763_v60 = vsel %vm1112_vm2, %v1586_v0, 0 }
 0x211   : > { %v1393_v14 = vadd.f32 %v3583_v42, %v1392_v28  ;;  %v2887_v29 = vpop.f32.mrb[42].mxu1  ;;  %2921 = vmatmul.mubr.msk.bf16.vlgmr.msra.gmra.mrb[28].mxu0 %vm1112_vm2, %v1570_v24  ;;  %v1760_v34 = vsel %vm1112_vm2, %v1585_v25, 0 }
 0x212   : > { %v1404_v43 = vadd.f32 %v2887_v29, %v3583_v42  ;;  %v1395_v45 = vpop.f32.mrb[43].mxu1  ;;  %2929 = vmatpush3.bf16.xpose.msra.mxu1 %v1711_v31  ;;  %2937 = vmatpush3.bf16.xpose.msra.mxu0 %v1760_v34  ;;  %v1437_v51 = vmax.f32 %v1401_v27, 0.0 }
 0x213   : > { %v1396_v49 = vadd.f32 %v3583_v42, %v1395_v45  ;;  %2930 = vmatprep.subr.bf16.mxu1 %v3225_v30  ;;  %2938 = vmatprep.subr.bf16.mxu0 %v3225_v30  ;;  %v1435_v53 = vmax.f32 %v1393_v14, 0.0  ;;  %v1567_v42 = vmul.f32 %v3627_v1, %v1539_v56 }
 0x214   : > { %v1438_v52 = vmax.f32 %v1404_v43, 0.0  ;;  %2944 = vmatprep.mubr.msk.bf16.mxu0 %vm3226_vm4, %v3225_v30 }
 0x215   : > { %v1436_v54 = vmax.f32 %v1396_v49, 0.0  ;;  %v1571_v61 = vpack.c.bf16 %v1567_v42, %v1567_v42 }
 0x216   : > { %v1588_v55 = vpack.c.bf16 %v1438_v52, %v1437_v51 }
 0x217   : > { %v1587_v57 = vpack.c.bf16 %v1436_v54, %v1435_v53  ;;  %v3227_v54 = vmov 0  }
 0x218   : > { %v1769_v2 = vsel %vm1112_vm2, %v1588_v55, 0  ;;  %3085 = vset.pattern.permute.xlu0 %v3227_v54  ;;  %3086 = vset.pattern.permute.xlu1 %v3227_v54 }
 0x219   : > { %v1766_v62 = vsel %vm1112_vm2, %v1587_v57, 0 }
 0x21a   : > { %2931 = vmatpush3.bf16.xpose.msra.mxu1 %v1714_v58  ;;  %2939 = vmatpush3.bf16.xpose.msra.mxu0 %v1763_v60 }
 0x21b   : > { %2940 = vmatprep.subr.bf16.mxu0 %v3225_v30  ;;  %2948 = vmatprep.subr.bf16.mxu1 %v3225_v30 }
 0x221   : > { %2933 = vmatmul.mubr.msk.bf16.vlgmr.msra.gmra.mrb[48].mxu1 %vm1112_vm2, %v1571_v61 }
 0x222   : > { %2941 = vmatpush3.bf16.xpose.msra.mxu0 %v1766_v62  ;;  %2949 = vmatpush3.bf16.msra.mxu1 %v3480_v47  ;;  %v1568_v47 = vmul.f32 %v3627_v1, %v1540_v63 }
 0x223   : > { %2950 = vmatprep.subr.bf16.mxu1 %v3225_v30  ;;  %2942 = vmatprep.subr.bf16.mxu0 %v3225_v30 }
 0x224   : > { %2956 = vmatprep.mubr.msk.bf16.mxu1 %vm3226_vm4, %v3225_v30  ;;  %v1572_v35 = vpack.c.bf16 %v1568_v47, %v1568_v47 }
 0x226   : > { %2951 = vmatpush3.bf16.msra.mxu1 %v3477_v44  ;;  %v1590_v44 = vstv %s1589_s27  ;;  %s3165_s27 = sshll.u32 %s3229_s3, 4  ;;  %s3166_s27 = int_to_ptr.vmem [resolvable:$false] %s3165_s27 }
 0x227   : > { %2952 = vmatprep.subr.bf16.mxu1 %v3225_v30  ;;  %s3167_s21 = scalar_lea.vmem %s3166_s27, 1024  ;;  %p3168_p1 = scmp.lt.s32.totalorder %s3831_s1, %s3166_s27 }
 0x228   : > { %p3169_p2 = scmp.lt.s32.totalorder %s3167_s21, %s3161_s26 }
 0x22a   : > { %2943 = vmatpush3.bf16.xpose.msra.mxu0 %v1769_v2  ;;  %2953 = vmatpush3.bf16.msra.mxu1 %v3500_v11  ;;  %p3170_p3 = por %p3169_p2, %p3168_p1 }
 0x22b   : > { %2954 = vmatprep.subr.bf16.mxu1 %v3225_v30  ;;  %2960 = vmatprep.subr.bf16.mxu0 %v3225_v30 }
 0x22c   : > { %p3171_p4 = pnand %p3170_p3, %p3164_p0 }
 0x22e   : > { %2955 = vmatpush3.bf16.msra.mxu1 %v3497_v8 }
 0x22f   : > { %2972 = vmatprep.subr.bf16.mxu1 %v3225_v30 }
 0x231   : > { %2945 = vmatmul.mubr.msk.bf16.vlgmr.msra.gmra.mrb[32].mxu0 %vm1112_vm2, %v1572_v35  ;;  %v2025_v35 = vld [vmem:[%s673_s4 + $0x10] sm:$0xff] }
 0x232   : > { %2961 = vmatpush3.bf16.msra.mxu0 %v3522_v41  ;;  %2968 = vmatprep.mubr.msk.bf16.mxu0 %vm3226_vm4, %v3225_v30 }
 0x233   : > { %2962 = vmatprep.subr.bf16.mxu0 %v3225_v30 }
 0x236   : > { %2963 = vmatpush3.bf16.msra.mxu0 %v3520_v38 }
 0x237   : > { %2964 = vmatprep.subr.bf16.mxu0 %v3225_v30 }
 0x23a   : > { %2965 = vmatpush3.bf16.msra.mxu0 %v3534_v5 }
 0x23b   : > { %2966 = vmatprep.subr.bf16.mxu0 %v3225_v30 }
 0x23e   : > { %2967 = vmatpush3.bf16.msra.mxu0 %v3532_v4 }
 0x23f   : > { %2984 = vmatprep.subr.bf16.mxu0 %v3225_v30 }
 0x2d4   : > { %v1640_v8 = vpop.f32.mrb[44].mxu1 }
 0x2d5   : > { %v1641_v11 = vadd.f32 %v1640_v8, %v1590_v44  ;;  %v2910_v41 = vpop.f32.mrb[45].mxu1 }
 0x2d6   : > { %v1643_v1 = vpop.f32.mrb[46].mxu1 }
 0x2d7   : > { %v1811_v7 = vsel %vm1112_vm2, %v1641_v11, -inf  ;;  %v2911_v9 = vpop.f32.mrb[47].mxu1  ;;  %v2026_v1 = vld [vmem:[%s673_s4 + $0x18] sm:$0xff] }
 0x2d8   : > { %1812 = vmax.xlane.f32.xlu0 %v1811_v7 }
 0x2e4   : > { %v1695_v38 = vpop.f32.mrb[28].mxu0 }
 0x2e5   : > { %v1696_v10 = vadd.f32 %v1695_v38, %v1590_v44  ;;  %v2922_v12 = vpop.f32.mrb[29].mxu0  ;;  %v3116_v38 = vld [vmem:[%s3896_s14 + $0x8] sm:$0xff]  }
 0x2e6   : > { %v1698_v5 = vpop.f32.mrb[30].mxu0 }
 0x2e7   : > { %v1814_v13 = vsel %vm1112_vm2, %v1696_v10, -inf  ;;  %v2923_v15 = vpop.f32.mrb[31].mxu0 }
 0x2e8   : > { %1815 = vmax.xlane.f32.xlu0 %v1814_v13 }
 0x2f4   : > { %v1750_v4 = vpop.f32.mrb[48].mxu1 }
 0x2f5   : > { %v1751_v16 = vadd.f32 %v1750_v4, %v1590_v44  ;;  %v2934_v17 = vpop.f32.mrb[49].mxu1 }
 0x2f6   : > { %v1753_v18 = vpop.f32.mrb[50].mxu1 }
 0x2f7   : > { %v2935_v19 = vpop.f32.mrb[51].mxu1  ;;  %v1817_v20 = vsel %vm1112_vm2, %v1751_v16, -inf }
 0x2f8   : > { %1818 = vmax.xlane.f32.xlu1 %v1817_v20 }
 0x304   : > { %v1805_v23 = vpop.f32.mrb[32].mxu0 }
 0x305   : > { %v1806_v0 = vadd.f32 %v1805_v23, %v1590_v44  ;;  %v2946_v24 = vpop.f32.mrb[33].mxu0 }
 0x306   : > { %v1808_v25 = vpop.f32.mrb[34].mxu0 }
 0x307   : > { %v2947_v26 = vpop.f32.mrb[35].mxu0  ;;  %v1820_v27 = vsel %vm1112_vm2, %v1806_v0, -inf }
 0x308   : > { %1821 = vmax.xlane.f32.xlu1 %v1820_v27 }
 0x365   : > { %v1813_v28 = vpop.xlane.xlu0 %1812 }
 0x366   : > { %v1823_v14 = vsub.f32 %v1641_v11, %v1813_v28  ;;  %v3115_v11 = vld [vmem:[%s3896_s14] sm:$0xff]  }
 0x368   : > { %v1827_v29 = vmul.f32 1.442695, %v1823_v14 }
 0x36a   : > { %3129 = vpow2.f32 %v1827_v29 }
 0x374   : > { %v3130_v31 = vpop.eup %3129 }
 0x375   : > { %v1816_v34 = vpop.xlane.xlu0 %1815  ;;  %v1835_v43 = vsel %vm1112_vm2, %v3130_v31, 0.0  ;;  %v1847_v45 = vpack.c.bf16 %v3130_v31, %v3130_v31 }
 0x376   : > { %v1824_v48 = vsub.f32 %v1696_v10, %v1816_v34  ;;  %1836 = vadd.xlane.f32.xlu0 %v1835_v43  ;;  %v2662_v10 = vld [vmem:[%s3893_s11] ss:$0 sm:$0xff] }
 0x377   : > { %2957 = vmatmul.mubr.msk.bf16.vlgmr.msra.gmra.mrb[52].mxu1 %vm1112_vm2, %v1847_v45 }
 0x378   : > { %v1829_v49 = vmul.f32 1.442695, %v1824_v48  ;;  %2973 = vmatpush3.bf16.msra.mxu1 %v3548_v22  ;;  %2980 = vmatprep.mubr.msk.bf16.mxu1 %vm3226_vm4, %v3225_v30 }
 0x379   : > { %2974 = vmatprep.subr.bf16.mxu1 %v3225_v30 }
 0x37a   : > { %3131 = vpow2.f32 %v1829_v49 }
 0x37c   : > { %2975 = vmatpush3.bf16.msra.mxu1 %v3546_v21 }
 0x37d   : > { %2976 = vmatprep.subr.bf16.mxu1 %v3225_v30 }
 0x380   : > { %2977 = vmatpush3.bf16.msra.mxu1 %v3560_v40 }
 0x381   : > { %2978 = vmatprep.subr.bf16.mxu1 %v3225_v30 }
 0x384   : > { %v3132_v51 = vpop.eup %3131  ;;  %2979 = vmatpush3.bf16.msra.mxu1 %v3558_v39 }
 0x385   : > { %v1819_v52 = vpop.xlane.xlu1 %1818  ;;  %v1838_v22 = vsel %vm1112_vm2, %v3132_v51, 0.0  ;;  %v1848_v53 = vpack.c.bf16 %v3132_v51, %v3132_v51  ;;  %2996 = vmatprep.subr.bf16.mxu1 %v3115_v11 }
 0x386   : > { %v1825_v55 = vsub.f32 %v1751_v16, %v1819_v52  ;;  %1839 = vadd.xlane.f32.xlu1 %v1838_v22  ;;  %v2672_v52 = vld [vmem:[%s3897_s15] ss:$0 sm:$0xff] }
 0x387   : > { %2969 = vmatmul.mubr.msk.bf16.vlgmr.msra.gmra.mrb[36].mxu0 %vm1112_vm2, %v1848_v53 }
 0x388   : > { %v1831_v21 = vmul.f32 1.442695, %v1825_v55  ;;  %2985 = vmatpush3.bf16.msra.mxu0 %v3495_v6  ;;  %2992 = vmatprep.mubr.msk.bf16.mxu0 %vm3226_vm4, %v3225_v30 }
 0x389   : > { %2986 = vmatprep.subr.bf16.mxu0 %v3225_v30 }
 0x38a   : > { %3133 = vpow2.f32 %v1831_v21 }
 0x38c   : > { %2987 = vmatpush3.bf16.msra.mxu0 %v3493_v3 }
 0x38d   : > { %2988 = vmatprep.subr.bf16.mxu0 %v3225_v30 }
 0x390   : > { %2989 = vmatpush3.bf16.msra.mxu0 %v3518_v36 }
 0x391   : > { %2990 = vmatprep.subr.bf16.mxu0 %v3225_v30 }
 0x394   : > { %v3134_v39 = vpop.eup %3133  ;;  %2991 = vmatpush3.bf16.msra.mxu0 %v3516_v33  ;;  %v2023_v33 = vld [vmem:[%s673_s4] sm:$0xff]  ;;  %s2698_s4 = sshll.u32 %s3361_s13, 9  ;;  %s3841_s13 = scalar_lea.sflag [#allocation4], %s654_s30 }
 0x395   : > { %v1822_v40 = vpop.xlane.xlu1 %1821  ;;  %v1841_v6 = vsel %vm1112_vm2, %v3134_v39, 0.0  ;;  %v1849_v56 = vpack.c.bf16 %v3134_v39, %v3134_v39  ;;  %s3837_s22 = scalar_lea.hbm %s3902_s20, %s2698_s4 }
 0x396   : > { %v1826_v57 = vsub.f32 %v1806_v0, %v1822_v40  ;;  %1842 = vadd.xlane.f32.xlu0 %v1841_v6 }
 0x397   : > { %2981 = vmatmul.mubr.msk.bf16.vlgmr.msra.gmra.mrb[56].mxu1 %vm1112_vm2, %v1849_v56 }
 0x398   : > { %v1833_v58 = vmul.f32 1.442695, %v1826_v57  ;;  %2997 = vmatpush3.bf16.msra.mxu1 %v3115_v11 }
 0x399   : > { %2998 = vmatprep.subr.bf16.mxu1 %v3116_v38 }
 0x39a   : > { %3135 = vpow2.f32 %v1833_v58 }
 0x39c   : > { %2999 = vmatpush3.bf16.msra.mxu1 %v3116_v38 }
 0x3a4   : > { %v3136_v3 = vpop.eup %3135 }
 0x3a5   : > { %v1844_v60 = vsel %vm1112_vm2, %v3136_v3, 0.0  ;;  %v1850_v36 = vpack.c.bf16 %v3136_v3, %v3136_v3 }
 0x3a6   : > { %1845 = vadd.xlane.f32.xlu1 %v1844_v60 }
 0x3a7   : > { %2993 = vmatmul.mubr.msk.bf16.vlgmr.msra.gmra.mrb[40].mxu0 %vm1112_vm2, %v1850_v36 }
 0x403   : > { %v1837_v30 = vpop.xlane.xlu0 %1836 }
 0x404   : > { %3137 = vrcp.f32 %v1837_v30 }
 0x40e   : > { %v3138_v42 = vpop.eup %3137 }
 0x40f   : > { %v2031_v61 = vmul.f32 %v3138_v42, %v2023_v33 }
 0x411   : > { %2037 = vperm.xlu0 %3085, %v2031_v61  }
 0x413   : > { %v1840_v62 = vpop.xlane.xlu1 %1839 }
 0x414   : > { %3139 = vrcp.f32 %v1840_v62 }
 0x41e   : > { %v3140_v63 = vpop.eup %3139 }
 0x41f   : > { %v2032_v2 = vmul.f32 %v3140_v63, %v2024_v59 }
 0x421   : > { %2042 = vperm.xlu1 %3086, %v2032_v2  }
 0x423   : > { %v1843_v47 = vpop.xlane.xlu0 %1842 }
 0x424   : > { %3141 = vrcp.f32 %v1843_v47 }
 0x42e   : > { %v3142_v44 = vpop.eup %3141 }
 0x42f   : > { %v2033_v8 = vmul.f32 %v3142_v44, %v2025_v35 }
 0x431   : > { %2047 = vperm.xlu1 %3086, %v2033_v8  }
 0x433   : > { %v1846_v41 = vpop.xlane.xlu1 %1845 }
 0x434   : > { %3143 = vrcp.f32 %v1846_v41 }
 0x43e   : > { %v3144_v7 = vpop.eup %3143 }
 0x43f   : > { %v2034_v9 = vmul.f32 %v3144_v7, %v2026_v1 }
 0x441   : > { %2052 = vperm.xlu1 %3086, %v2034_v9  }
 0x445   : > { %1547 = vrot.lane.b32.xlu1 %v2662_v10, %s3228_s0 }
 0x44a   : > { %v1888_v12 = vpop.f32.mrb[52].mxu1 }
 0x44b   : > { %v2958_v5 = vpop.f32.mrb[53].mxu1 }
 0x44c   : > { %v1891_v13 = vpop.f32.mrb[54].mxu1 }
 0x44d   : > { %v2959_v15 = vpop.f32.mrb[55].mxu1 }
 0x45a   : > { %v1931_v4 = vpop.f32.mrb[36].mxu0 }
 0x45b   : > { %v2970_v16 = vpop.f32.mrb[37].mxu0 }
 0x45c   : > { %v1934_v17 = vpop.f32.mrb[38].mxu0 }
 0x45d   : > { %v2971_v18 = vpop.f32.mrb[39].mxu0 }
 0x46a   : > { %v1974_v19 = vpop.f32.mrb[56].mxu1 }
 0x46b   : > { %v2982_v20 = vpop.f32.mrb[57].mxu1 }
 0x46c   : > { %v1977_v23 = vpop.f32.mrb[58].mxu1 }
 0x46d   : > { %v2983_v0 = vpop.f32.mrb[59].mxu1 }
 0x47a   : > { %v2017_v24 = vpop.f32.mrb[40].mxu0 }
 0x47b   : > { %v2994_v25 = vpop.f32.mrb[41].mxu0 }
 0x47c   : > { %v2020_v26 = vpop.f32.mrb[42].mxu0 }
 0x47d   : > { %v2995_v27 = vpop.f32.mrb[43].mxu0 }
 0x490   : > { %v2038_v28 = vpop.permute.xlu0 %2037 }
 0x491   : > { %v2055_v29 = vmul.f32 %v2038_v28, %v1888_v12 }
 0x4a0   : > { %v2043_v14 = vpop.permute.xlu1 %2042 }
 0x4a1   : > { %v2056_v31 = vmul.f32 %v2043_v14, %v1931_v4 }
 0x4a3   : > { %v2059_v34 = vpack.c.bf16 %v2056_v31, %v2055_v29 }
 0x4a5   : > { %3000 = vmatprep.mubr.msk.bf16.mxu1 %vm1197_vm3, %v2059_v34 }
 0x4b0   : > { %v2048_v43 = vpop.permute.xlu1 %2047 }
 0x4b1   : > { %v2057_v48 = vmul.f32 %v2048_v43, %v1974_v19 }
 0x4c0   : > { %v2053_v45 = vpop.permute.xlu1 %2052 }
 0x4c1   : > { %v2058_v49 = vmul.f32 %v2053_v45, %v2017_v24 }
 0x4c3   : > { %v2060_v51 = vpack.c.bf16 %v2058_v49, %v2057_v48 }
 0x4c4   : > { %v1548_v60 = vpop.permute.xlu1 %1547 }
 0x4c5   : > { %3001 = vmatmul.mubr.msk.bf16.vlgmr.msra.gmra.mrb[60].mxu1 %vm1197_vm3, %v2060_v51  ;;  %v1552_v36 = vadd.f32 %v3601_v32, %v1548_v60  ;;  %v1550_v42 = vadd.f32 %v1548_v60, %v3608_v37  ;;  %v1551_v59 = vadd.f32 %v1548_v60, %v3613_v50  ;;  %v1553_v11 = vadd.f32 %v3610_v46, %v1548_v60 }
 0x4c7   : > { %v1556_v30 = vmax.f32 %v1552_v36, 0.0  ;;  %v1554_v63 = vmax.f32 %v1550_v42, 0.0  ;;  %v1555_v35 = vmax.f32 %v1551_v59, 0.0  ;;  %v1557_v1 = vmax.f32 %v1553_v11, 0.0 }
 0x598   : > { %v3002_v22 = vpop.f32.mrb[60].mxu1 }
 0x599   : > { %v2133_v53 = vadd.f32 %v3002_v22, %v2672_v52  ;;  %v2124_v54 = vpop.f32.mrb[61].mxu1 }
 0x59a   : > { %v3003_v55 = vpop.f32.mrb[62].mxu1  ;;  %v2125_v39 = vadd.f32 %v2672_v52, %v2124_v54 }
 0x59b   : > { %v2141_v21 = vmax.f32 %v2133_v53, 0.0  ;;  %v2127_v40 = vpop.f32.mrb[63].mxu1  ;;  %v2136_v57 = vadd.f32 %v3003_v55, %v2672_v52 }
 0x59c   : > { %v2139_v6 = vmax.f32 %v2125_v39, 0.0  ;;  %v2128_v56 = vadd.f32 %v2672_v52, %v2127_v40 }
 0x59d   : > { %2151 = vrot.lane.b32.xlu1 %v2141_v21, %s3228_s0  ;;  %v2142_v3 = vmax.f32 %v2136_v57, 0.0  ;;  %v3117_v57 = vld [vmem:[%s3898_s16] sm:$0xff]  }
 0x59e   : > { %v2140_v58 = vmax.f32 %v2128_v56, 0.0  ;;  %3004 = vmatprep.subr.bf16.mxu1 %v3117_v57 }
 0x59f   : > { %3005 = vmatpush3.bf16.msra.mxu1 %v3117_v57 }
 0x5a1   : > { %2147 = vrot.lane.b32.xlu1 %v2139_v6, %s3228_s0 }
 0x5a5   : > { %2149 = vrot.lane.b32.xlu1 %v2140_v58, %s3228_s0  ;;  %v3118_v58 = vld [vmem:[%s3898_s16 + $0x8] sm:$0xff]  }
 0x5a6   : > { %3006 = vmatprep.subr.bf16.mxu1 %v3118_v58 }
 0x5a7   : > { %3007 = vmatpush3.bf16.msra.mxu1 %v3118_v58 }
 0x5a9   : > { %2153 = vrot.lane.b32.xlu1 %v2142_v3, %s3228_s0  ;;  %v3119_v3 = vld [vmem:[%s3898_s16 + $0x10] sm:$0xff]  }
 0x5aa   : > { %3008 = vmatprep.subr.bf16.mxu1 %v3119_v3 }
 0x5ab   : > { %3009 = vmatpush3.bf16.msra.mxu1 %v3119_v3 }
 0x60f   : > { %v2152_v33 = vpop.permute.xlu1 %2151 }
 0x610   : > { %v2161_v61 = vmul.f32 %v2152_v33, %v1556_v30 }
 0x612   : > { %v2165_v62 = vand.u32 2147483647, %v2161_v61  ;;  %vm2197_vm12 = vcmp.ge.f32.partialorder %v2161_v61, 0.0 }
 0x613   : > { %v2148_v2 = vpop.permute.xlu1 %2147 }
 0x614   : > { %3145 = vrsqrt.f32 %v2165_v62  ;;  %v2159_v47 = vmul.f32 %v2148_v2, %v1554_v63  ;;  %vm2183_vm5 = vcmp.eq.f32.partialorder %v2165_v62, inf  ;;  %v2186_v5 = vand.u32 2147483648, %v2165_v62  ;;  %v3121_v2 = vld [vmem:[%s3900_s18] sm:$0xff]  }
 0x615   : > { %vm2185_vm6 = vcmp.eq.f32.partialorder %v2165_v62, 0.0  ;;  %3016 = vmatprep.subr.bf16.mxu0 %v3121_v2 }
 0x616   : > { %v2163_v44 = vand.u32 2147483647, %v2159_v47  ;;  %vm2195_vm10 = vcmp.ge.f32.partialorder %v2159_v47, 0.0  ;;  %v3122_v47 = vld [vmem:[%s3900_s18 + $0x8] sm:$0xff]   ;;  %3017 = vmatpush3.bf16.msra.mxu0 %v3121_v2 }
 0x617   : > { %v2150_v8 = vpop.permute.xlu1 %2149  ;;  %3018 = vmatprep.subr.bf16.mxu0 %v3122_v47 }
 0x618   : > { %v2160_v41 = vmul.f32 %v2150_v8, %v1555_v35  ;;  %3147 = vrsqrt.f32 %v2163_v44  ;;  %vm2169_vm7 = vcmp.eq.f32.partialorder %v2163_v44, inf  ;;  %v2172_v46 = vand.u32 2147483648, %v2163_v44 }
 0x619   : > { %vm2171_vm8 = vcmp.eq.f32.partialorder %v2163_v44, 0.0 }
 0x61a   : > { %v2164_v32 = vand.u32 2147483647, %v2160_v41  ;;  %vm2196_vm13 = vcmp.ge.f32.partialorder %v2160_v41, 0.0  ;;  %v3123_v41 = vld [vmem:[%s3900_s18 + $0x10] sm:$0xff]   ;;  %3019 = vmatpush3.bf16.msra.mxu0 %v3122_v47 }
 0x61b   : > { %v2154_v7 = vpop.permute.xlu1 %2153  ;;  %3020 = vmatprep.subr.bf16.mxu0 %v3123_v41 }
 0x61c   : > { %3149 = vrsqrt.f32 %v2164_v32  ;;  %v2162_v37 = vmul.f32 %v2154_v7, %v1557_v1  ;;  %vm2176_vm9 = vcmp.eq.f32.partialorder %v2164_v32, inf  ;;  %v2179_v23 = vand.u32 2147483648, %v2164_v32 }
 0x61d   : > { %vm2178_vm11 = vcmp.eq.f32.partialorder %v2164_v32, 0.0 }
 0x61e   : > { %v3146_v9 = vpop.eup %3145  ;;  %v2166_v10 = vand.u32 2147483647, %v2162_v37  ;;  %vm2198_vm0 = vcmp.ge.f32.partialorder %v2162_v37, 0.0  ;;  %v3124_v37 = vld [vmem:[%s3900_s18 + $0x18] sm:$0xff]   ;;  %3021 = vmatpush3.bf16.msra.mxu0 %v3123_v41 }
 0x61f   : > { %v2182_v38 = vmul.f32 %v3146_v9, %v2165_v62  ;;  %3022 = vmatprep.subr.bf16.mxu0 %v3124_v37 }
 0x620   : > { %3151 = vrsqrt.f32 %v2166_v10  ;;  %vm2190_vm14 = vcmp.eq.f32.partialorder %v2166_v10, inf  ;;  %v2193_v34 = vand.u32 2147483648, %v2166_v10  ;;  %vm2192_vm15 = vcmp.eq.f32.partialorder %v2166_v10, 0.0 }
 0x621   : > { %v2184_v50 = vsel %vm2183_vm5, %v2165_v62, %v2182_v38  ;;  %v3120_v62 = vld [vmem:[%s3898_s16 + $0x18] sm:$0xff]  }
 0x622   : > { %v3148_v12 = vpop.eup %3147  ;;  %v2187_v15 = vsel %vm2185_vm6, %v2186_v5, %v2184_v50  ;;  %3010 = vmatprep.subr.bf16.mxu1 %v3120_v62  ;;  %v3125_v50 = vld [vmem:[%s3900_s18 + $0x20] sm:$0xff]   ;;  %3023 = vmatpush3.bf16.msra.mxu0 %v3124_v37 }
 0x623   : > { %v2168_v13 = vmul.f32 %v3148_v12, %v2163_v44  ;;  %v2201_v19 = vsub.f32 0.0, %v2187_v15  ;;  %3011 = vmatpush3.bf16.msra.mxu1 %v3120_v62  ;;  %3024 = vmatprep.subr.bf16.mxu0 %v3125_v50  ;;  %v3126_v12 = vld [vmem:[%s3900_s18 + $0x28] sm:$0xff]  }
 0x625   : > { %v2170_v16 = vsel %vm2169_vm7, %v2163_v44, %v2168_v13  ;;  %v3768_v14 = vsel %vm2197_vm12, %v2187_v15, %v2201_v19  ;;  %v3127_v15 = vld [vmem:[%s3900_s18 + $0x30] sm:$0xff]  }
 0x626   : > { %v3150_v4 = vpop.eup %3149  ;;  %v2173_v17 = vsel %vm2171_vm8, %v2172_v46, %v2170_v16  ;;  %v2209_v49 = vmul.f32 %v3768_v14, %v3768_v14  ;;  %3025 = vmatpush3.bf16.msra.mxu0 %v3125_v50  ;;  %v3128_v46 = vld [vmem:[%s3900_s18 + $0x38] sm:$0xff]  }
 0x627   : > { %v2175_v18 = vmul.f32 %v3150_v4, %v2164_v32  ;;  %v2199_v20 = vsub.f32 0.0, %v2173_v17  ;;  %3026 = vmatprep.subr.bf16.mxu0 %v3126_v12  ;;  %v2677_v4 = vld [vmem:[%s3899_s17] ss:$0 sm:$0xff] }
 0x629   : > { %v2177_v0 = vsel %vm2176_vm9, %v2164_v32, %v2175_v18  ;;  %v3764_v24 = vsel %vm2195_vm10, %v2173_v17, %v2199_v20 }
 0x62a   : > { %v2180_v25 = vsel %vm2178_vm11, %v2179_v23, %v2177_v0  ;;  %v3152_v26 = vpop.eup %3151  ;;  %v2207_v28 = vmul.f32 %v3764_v24, %v3764_v24  ;;  %3027 = vmatpush3.bf16.msra.mxu0 %v3126_v12 }
 0x62b   : > { %v2200_v27 = vsub.f32 0.0, %v2180_v25  ;;  %v2189_v29 = vmul.f32 %v3152_v26, %v2166_v10  ;;  %3028 = vmatprep.subr.bf16.mxu0 %v3127_v15 }
 0x62c   : > { %2215 = vrot.lane.b32.xlu0 %v2207_v28, %s3228_s0 }
 0x62d   : > { %v2204_v31 = vsel %vm2196_vm13, %v2180_v25, %v2200_v27  ;;  %v2191_v43 = vsel %vm2190_vm14, %v2166_v10, %v2189_v29 }
 0x62e   : > { %v2208_v45 = vmul.f32 %v2204_v31, %v2204_v31  ;;  %v2194_v48 = vsel %vm2192_vm15, %v2193_v34, %v2191_v43  ;;  %3029 = vmatpush3.bf16.msra.mxu0 %v3127_v15 }
 0x62f   : > { %v2202_v51 = vsub.f32 0.0, %v2194_v48  ;;  %3030 = vmatprep.subr.bf16.mxu0 %v3128_v46 }
 0x630   : > { %2217 = vrot.lane.b32.xlu1 %v2208_v45, %s3228_s0  ;;  %2219 = vrot.lane.b32.xlu0 %v2209_v49, %s3228_s0 }
 0x631   : > { %v2206_v52 = vsel %vm2198_vm0, %v2194_v48, %v2202_v51 }
 0x632   : > { %v2210_v22 = vmul.f32 %v2206_v52, %v2206_v52  ;;  %3031 = vmatpush3.bf16.msra.mxu0 %v3128_v46 }
 0x634   : > { %2221 = vrot.lane.b32.xlu1 %v2210_v22, %s3228_s0 }
 0x69e   : > { %v2216_v53 = vpop.permute.xlu0 %2215 }
 0x69f   : > { %v2227_v54 = vsel %vm1112_vm2, %v2216_v53, 0.0 }
 0x6a0   : > { %2228 = vadd.xlane.f32.xlu0 %v2227_v54 }
 0x6a2   : > { %v2218_v55 = vpop.permute.xlu1 %2217  ;;  %v2220_v21 = vpop.permute.xlu0 %2219 }
 0x6a3   : > { %v2230_v39 = vsel %vm1112_vm2, %v2218_v55, 0.0  ;;  %v2233_v40 = vsel %vm1112_vm2, %v2220_v21, 0.0 }
 0x6a4   : > { %2231 = vadd.xlane.f32.xlu1 %v2230_v39  ;;  %2234 = vadd.xlane.f32.xlu0 %v2233_v40 }
 0x6a6   : > { %v2222_v6 = vpop.permute.xlu1 %2221 }
 0x6a7   : > { %v2236_v56 = vsel %vm1112_vm2, %v2222_v6, 0.0 }
 0x6a8   : > { %2237 = vadd.xlane.f32.xlu0 %v2236_v56 }
 0x72d   : > { %v2229_v60 = vpop.xlane.xlu0 %2228 }
 0x72e   : > { %v2239_v36 = vmax.f32 %v2229_v60, 1e-24 }
 0x730   : > { %3153 = vrsqrt.f32 %v2239_v36 }
 0x731   : > { %v2232_v30 = vpop.xlane.xlu1 %2231  ;;  %v2235_v33 = vpop.xlane.xlu0 %2234 }
 0x732   : > { %v2240_v42 = vmax.f32 %v2232_v30, 1e-24  ;;  %v2241_v61 = vmax.f32 %v2235_v33, 1e-24 }
 0x734   : > { %3155 = vrsqrt.f32 %v2240_v42 }
 0x735   : > { %v2238_v59 = vpop.xlane.xlu0 %2237  ;;  %3157 = vrsqrt.f32 %v2241_v61 }
 0x736   : > { %v2242_v63 = vmax.f32 %v2238_v59, 1e-24 }
 0x738   : > { %3159 = vrsqrt.f32 %v2242_v63 }
 0x73a   : > { %v3154_v35 = vpop.eup %3153 }
 0x73b   : > { %v2247_v8 = vmul.f32 %v3154_v35, %v3764_v24 }
 0x73e   : > { %v3156_v44 = vpop.eup %3155 }
 0x73f   : > { %v2248_v11 = vmul.f32 %v3156_v44, %v2204_v31  ;;  %v3158_v32 = vpop.eup %3157  ;;  %v2684_v31 = vld [vmem:[%s3901_s19] ss:$0 sm:$0xff] }
 0x740   : > { %v2249_v9 = vmul.f32 %v3158_v32, %v3768_v14 }
 0x741   : > { %v2251_v1 = vpack.c.bf16 %v2248_v11, %v2247_v8 }
 0x742   : > { %v3160_v7 = vpop.eup %3159 }
 0x743   : > { %2270 = vrot.lane.b32.xlu1 %v2251_v1, %s3228_s0  ;;  %v2250_v38 = vmul.f32 %v3160_v7, %v2206_v52 }
 0x745   : > { %v2252_v10 = vpack.c.bf16 %v2250_v38, %v2249_v9 }
 0x747   : > { %2272 = vrot.lane.b32.xlu0 %v2252_v10, %s3228_s0 }
 0x7b5   : > { %v2271_v5 = vpop.permute.xlu1 %2270 }
 0x7b6   : > { %3012 = vmatprep.mubr.msk.bf16.mxu1 %vm1112_vm2, %v2271_v5 }
 0x7b9   : > { %v2273_v13 = vpop.permute.xlu0 %2272 }
 0x7ba   : > { %3013 = vmatmul.mubr.msk.bf16.vlgmr.msra.gmra.mrb[64].mxu1 %vm1112_vm2, %v2273_v13 }
 0x88d   : > { %v3014_v16 = vpop.f32.mrb[64].mxu1 }
 0x88e   : > { %v2347_v17 = vadd.f32 %v3014_v16, %v2677_v4  ;;  %v2338_v18 = vpop.f32.mrb[65].mxu1 }
 0x88f   : > { %v2339_v19 = vadd.f32 %v2677_v4, %v2338_v18  ;;  %v3015_v20 = vpop.f32.mrb[66].mxu1 }
 0x890   : > { %v2350_v23 = vadd.f32 %v3015_v20, %v2677_v4  ;;  %v2341_v0 = vpop.f32.mrb[67].mxu1  ;;  %v2355_v25 = vmax.f32 %v2347_v17, 0.0 }
 0x891   : > { %v2342_v24 = vadd.f32 %v2677_v4, %v2341_v0  ;;  %v2353_v27 = vmax.f32 %v2339_v19, 0.0 }
 0x892   : > { %v2356_v26 = vmax.f32 %v2350_v23, 0.0 }
 0x893   : > { %v2354_v28 = vmax.f32 %v2342_v24, 0.0 }
 0x894   : > { %v2358_v14 = vpack.c.bf16 %v2356_v26, %v2355_v25 }
 0x895   : > { %v2357_v29 = vpack.c.bf16 %v2354_v28, %v2353_v27 }
 0x897   : > { %3032 = vmatprep.mubr.bf16.mxu0 %v2357_v29 }
 0x898   : > { %3033 = vmatmul.mubr.bf16.vlgmr.msra.gmra.mrb[44].mxu0 %v2358_v14 }
 0x96b   : > { %v3034_v34 = vpop.f32.mrb[44].mxu0 }
 0x96c   : > { %v2473_v43 = vadd.f32 %v3034_v34, %v2684_v31  ;;  %v2464_v45 = vpop.f32.mrb[45].mxu0 }
 0x96d   : > { %v2465_v48 = vadd.f32 %v2684_v31, %v2464_v45  ;;  %v3035_v49 = vpop.f32.mrb[46].mxu0 }
 0x96e   : > { %2481 = vst.msk [vmem:[%s656_s2 + $0x10] sm:$0xff] %vm1197_vm3, %v2473_v43  ;;  %v2476_v51 = vadd.f32 %v3035_v49, %v2684_v31  ;;  %v2467_v52 = vpop.f32.mrb[47].mxu0 }
 0x96f   : > { %2479 = vst.msk [vmem:[%s656_s2] sm:$0xff] %vm1197_vm3, %v2465_v48  ;;  %v2468_v22 = vadd.f32 %v2684_v31, %v2467_v52 }
 0x970   : > { %2482 = vst.msk [vmem:[%s656_s2 + $0x18] sm:$0xff] %vm1197_vm3, %v2476_v51 }
 0x971   : > { %2480 = vst.msk [vmem:[%s656_s2 + $0x8] sm:$0xff] %vm1197_vm3, %v2468_v22 }
 0x972   : > { %3174 = shalt.err (!%p3171_p4)
}
 0x973   : > { %s3175_s30 = scalar_lea.hbm %s3837_s22, 512  ;;  %s3179_s0 = scalar_lea.hbm %s3902_s20, 1024 }
 0x974   : > { %p3176_p7 = scmp.ne.s32.totalorder %s3837_s22, %s3175_s30  ;;  %p3180_p10 = scmp.lt.u32.totalorder %s3837_s22, %s3902_s20 }
 0x975   : > { %p3181_p11 = scmp.lt.u32.totalorder %s3179_s0, %s3175_s30  ;;  %p3183_p13 = scmp.lt.u32.totalorder %s3175_s30, %s3837_s22 }
 0x976   : > { %p3177_p8 = pnand %p3176_p7, %p3378_p5 }
 0x977   : > { %p3182_p12 = por %p3181_p11, %p3180_p10 }
 0x978   : > { %p3178_p9 = pneg %p3177_p8 }
 0x979   : > { %p3184_p0 = por %p3183_p13, %p3182_p12 }
 0x97b   : > { %p3185_p1 = pnand %p3184_p0, %p3178_p9 }
 0x97d   : > { %3188 = shalt.err (!%p3185_p1)
}
 0x97e   : > { %s3230_s26 = smov 128   ;;  %s3231_s27 = smov 8  }
 0x97f   : > { %3040 = dma.vmem_to_hbm [thread:$0]  (%p3378_p5), %s3831_s1, 512, %s3837_s22, %s3841_s13, %s3230_s26, %s3230_s26, %s3231_s27  }
 0x980 PF: > { %p3046_p2 = scmp.ge.s32.totalorder %s3223_s25, 2  ;;  %s2512_s2 = sand.u32 1, %s3211_s23  }
 0x981   : > { %s2513_s30 = scalar_lea.sflag [#allocation4], %s2512_s2 }
 0x982   : > { %p3043_p3 = pnand %p3046_p2, %p3382_p6 }
 0x984   : > { %3206 = dma.done.wait (!%p3043_p3), %s2513_s30, 512  }
 0x985   : > { %3208 = vsyncadd (!%p3043_p3), %s2513_s30, 4294966784  ;;  %s3924_s25 = sld [smem:[#allocation7_spill]]  ;;  %s3925_s4 = sld [smem:[#allocation6_spill]] }
 0x986   : > { %s3926_s2 = sld [smem:[#allocation8_spill]]  ;;  %s3927_s23 = smov %s3215_s24 }
 0x98b   : > { %p31_p4 = scmp.ge.s32.totalorder %s3924_s25, 4   ;;  %s3928_s24 = smov %s3925_s4 }
 0x98d   :  { %33 = sbr.rel (!%p31_p4) target bundleno = 10 (0xa), region = 141 }
 0x994   :  { %2518 = vsyncpa [#allocation4], 1 }
 0x995   :  { %2520 = vsyncpa [#allocation4 + $0x1], 1 }

</bundles_post_ra>
